<compile_context>
chip_gen: v5e
topology: v5e:2x2
jax: 0.10.0
libtpu: 0.0.40
codegen_flags: <defaults>
</compile_context>

<pallas_src>
import math
import functools

import jax
import jax.numpy as jnp
from jax import lax
from jax.experimental import pallas as pl
from jax.experimental.pallas import tpu as pltpu


# ----------------------------- kernel helpers --------------------------------

def _layer_norm(x, gamma, beta, eps):
    # Single reduction pass: var = E[x^2] - mean^2 (clamped to avoid tiny negatives).
    m = jnp.mean(x, axis=-1, keepdims=True)
    m2 = jnp.mean(x * x, axis=-1, keepdims=True)
    var = jnp.maximum(m2 - m * m, 0.0)
    return gamma * ((x - m) * lax.rsqrt(var + eps)) + beta


def _encoder_kernel(nhead,
                    x_ref, mask_ref, sel_ref,
                    wq_ref, wk_ref, wv_ref, bq_ref, bk_ref, bv_ref,
                    wo_ref, bo_ref, ln1g_ref, ln1b_ref,
                    w1_ref, b1_ref, w2_ref, b2_ref, ln2g_ref, ln2b_ref,
                    wl_ref, bl_ref, ng_ref, nb_ref,
                    y_ref, h_ref):
    """One encoder layer per grid step (axis 1); activation carried in VMEM scratch.
    Last layer: masked-position gather + linear + gelu + LayerNorm -> y_ref."""
    layer = pl.program_id(1)
    nlayers = pl.num_programs(1)
    Bt, S, d = x_ref.shape
    hd = d // nhead
    scale = 1.0 / math.sqrt(hd)

    # Layer 0: load embedded + positionally-encoded input into the resident scratch.
    @pl.when(layer == 0)
    def _init():
        h_ref[...] = x_ref[...].reshape(Bt * S, d)

    x = h_ref[...]                                   # (Bt*S, d) f32 residual stream
    xb = x.astype(jnp.bfloat16)

    # Full-width (d,d) bf16 projections -> (Bt*S, d): one wide GEMM per projection.
    q = jnp.dot(xb, wq_ref[0], preferred_element_type=jnp.float32) + bq_ref[0]
    k = jnp.dot(xb, wk_ref[0], preferred_element_type=jnp.float32) + bk_ref[0]
    v = jnp.dot(xb, wv_ref[0], preferred_element_type=jnp.float32) + bv_ref[0]

    def split_heads(t):
        # (Bt*S, d) -> (Bt*nhead, S, hd), batch-major then head.
        return jnp.swapaxes(t.reshape(Bt, S, nhead, hd), 1, 2).reshape(Bt * nhead, S, hd)

    qh = split_heads(q).astype(jnp.bfloat16)
    kh = split_heads(k).astype(jnp.bfloat16)
    vh = split_heads(v).astype(jnp.bfloat16)

    # Head-batched attention (one batched einsum per stage; softmax stats in f32).
    s = jnp.einsum('bqe,bke->bqk', qh, kh,
                   preferred_element_type=jnp.float32) * scale + mask_ref[...]
    s = s - jnp.max(s, axis=-1, keepdims=True)
    p = jnp.exp(s)
    p = p * pl.reciprocal(jnp.sum(p, axis=-1, keepdims=True), approx=True)
    ctx = jnp.einsum('bqk,bke->bqe', p.astype(jnp.bfloat16), vh,
                     preferred_element_type=jnp.float32)          # (Bt*nhead, S, hd)
    # Merge heads back to (Bt*S, d); single (d,d) output-projection GEMM.
    ctx = jnp.swapaxes(ctx.reshape(Bt, nhead, S, hd), 1, 2).reshape(Bt * S, d)
    attn = jnp.dot(ctx.astype(jnp.bfloat16), wo_ref[0],
                   preferred_element_type=jnp.float32) + bo_ref[0]

    # Add & norm 1 (post-norm, eps=1e-5), ReLU feed-forward, add & norm 2.
    x1 = _layer_norm(x + attn, ln1g_ref[0], ln1b_ref[0], 1e-5)
    ff = jnp.dot(x1.astype(jnp.bfloat16), w1_ref[0],
                 preferred_element_type=jnp.float32) + b1_ref[0]
    ff = jnp.maximum(ff, 0.0)
    ff = jnp.dot(ff.astype(jnp.bfloat16), w2_ref[0],
                 preferred_element_type=jnp.float32) + b2_ref[0]
    h_ref[...] = _layer_norm(x1 + ff, ln2g_ref[0], ln2b_ref[0], 1e-5)

    # Last layer: masked-position gather + LayerNorm(gelu(linear(.))) -> y_ref.
    @pl.when(layer == nlayers - 1)
    def _head():
        P = sel_ref.shape[1]
        hfin = h_ref[...].reshape(Bt, S, d)
        hm = jnp.einsum('bps,bsd->bpd', sel_ref[...].astype(jnp.float32), hfin,
                        preferred_element_type=jnp.float32).reshape(Bt * P, d)
        z = jnp.dot(hm.astype(jnp.bfloat16), wl_ref[...],
                    preferred_element_type=jnp.float32) + bl_ref[...]
        g = z * 0.5 * (1.0 + lax.erf(z / math.sqrt(2.0)))          # erf GELU
        y = _layer_norm(g, ng_ref[...], nb_ref[...], 1e-12)        # custom LN eps
        y_ref[...] = y.reshape(Bt, P, d)


def _decoder_kernel(y_ref, wd_ref, bd_ref, out_ref):
    # One lane-dense vocab slab per grid step; wd streams HBM->VMEM, never resident.
    out_ref[...] = (jnp.dot(y_ref[...], wd_ref[...],
                            preferred_element_type=jnp.float32) + bd_ref[...])


# ----------------------------- pallas_call wrapper -----------------------------

def _stacked_spec(a):
    nd = a.ndim
    return pl.BlockSpec((1,) + a.shape[1:],
                        lambda bb, l, _nd=nd: (l,) + (0,) * (_nd - 1))


def _shared_spec(a):
    nd = a.ndim
    return pl.BlockSpec(a.shape, lambda bb, l, _nd=nd: (0,) * _nd)


def trajectory_transformer_forward(params, src, src_mask, masked_pos, nhead,
                                   batch_block=None, decoder_tile=None):
    """src: (B,S) int tokens; src_mask: (B,S) bool key-padding mask (True = pad);
    masked_pos: (B,P) int positions. Returns logits of shape (B, P, ntokens)."""
    emb = params["emb"]
    d = emb.shape[1]
    B, S = src.shape
    P = masked_pos.shape[1]
    st = params["stacked"]
    hp = params["head"]
    L = st["wq"].shape[0]
    ntokens = params["ntokens"]
    npad = hp["wd"].shape[1]

    if batch_block is None:
        # >= 2 parallel batch blocks whenever possible so both v7x TensorCores get work.
        Bt = B // 2 if (B % 2 == 0 and B >= 2) else B
    else:
        Bt = batch_block
    assert B % Bt == 0

    # Embedding lookup + positional encoding stay in XLA (cheap gather/add).
    x = jnp.take(emb, src, axis=0).astype(jnp.float32) * math.sqrt(d)
    x = x + params["pe"][:, :S]
    # Additive key-padding mask, replicated per head: (B*nhead, 1, S).
    add_mask = jnp.where(src_mask, -1e9, 0.0).astype(jnp.float32)
    add_mask = jnp.broadcast_to(add_mask[:, None, None, :],
                                (B, nhead, 1, S)).reshape(B * nhead, 1, S)
    # bf16 one-hot selector for the masked-position gather (0/1 values, exact).
    sel = (masked_pos[:, :, None].astype(jnp.int32)
           == jnp.arange(S, dtype=jnp.int32)[None, None, :]).astype(jnp.bfloat16)

    in_specs = [
        pl.BlockSpec((Bt, S, d), lambda bb, l: (bb, 0, 0)),
        pl.BlockSpec((Bt * nhead, 1, S), lambda bb, l: (bb, 0, 0)),
        pl.BlockSpec((Bt, P, S), lambda bb, l: (bb, 0, 0)),
        _stacked_spec(st["wq"]), _stacked_spec(st["wk"]), _stacked_spec(st["wv"]),
        _stacked_spec(st["bq"]), _stacked_spec(st["bk"]), _stacked_spec(st["bv"]),
        _stacked_spec(st["wo"]), _stacked_spec(st["bo"]),
        _stacked_spec(st["ln1g"]), _stacked_spec(st["ln1b"]),
        _stacked_spec(st["w1"]), _stacked_spec(st["b1"]),
        _stacked_spec(st["w2"]), _stacked_spec(st["b2"]),
        _stacked_spec(st["ln2g"]), _stacked_spec(st["ln2b"]),
        _shared_spec(hp["wl"]), _shared_spec(hp["bl"]),
        _shared_spec(hp["ng"]), _shared_spec(hp["nb"]),
    ]

    # Explicit VMEM budget: scratch + double-buffered activation blocks + one layer's
    # streamed bf16 weight set (x2 pipeline buffers) + small resident head weights.
    def _nbytes(a):
        return int(a.size) * a.dtype.itemsize
    per_layer_w = sum(_nbytes(v) // L for v in st.values())
    head_small = sum(_nbytes(hp[k]) for k in ("wl", "bl", "ng", "nb"))
    blk = (3 * Bt * S * d * 4
           + 2 * (Bt * nhead * S * 4 + Bt * P * S * 2 + Bt * P * d * 4)
           + 2 * (per_layer_w + head_small))
    vmem_limit = int(min(100 * 2**20, max(32 * 2**20, 3 * blk)))

    y = pl.pallas_call(
        functools.partial(_encoder_kernel, nhead),
        grid_spec=pltpu.PrefetchScalarGridSpec(
            num_scalar_prefetch=0,
            grid=(B // Bt, L),                  # batch blocks (parallel) x layers (carried)
            in_specs=in_specs,
            out_specs=pl.BlockSpec((Bt, P, d), lambda bb, l: (bb, 0, 0)),
            scratch_shapes=[pltpu.VMEM((Bt * S, d), jnp.float32)],   # resident activation
        ),
        out_shape=jax.ShapeDtypeStruct((B, P, d), jnp.float32),
        compiler_params=pltpu.CompilerParams(
            dimension_semantics=("parallel", "arbitrary"),
            vmem_limit_bytes=vmem_limit),
    )(x, add_mask, sel,
      st["wq"], st["wk"], st["wv"], st["bq"], st["bk"], st["bv"],
      st["wo"], st["bo"], st["ln1g"], st["ln1b"],
      st["w1"], st["b1"], st["w2"], st["b2"], st["ln2g"], st["ln2b"],
      hp["wl"], hp["bl"], hp["ng"], hp["nb"])

    # Decoder GEMM as a second pallas_call tiled over lane-dense vocab slabs.
    M = B * P
    y2 = y.reshape(M, d).astype(jnp.bfloat16)
    if decoder_tile is None:
        TN = next(t for t in (512, 256, 128) if npad % t == 0)
    else:
        TN = decoder_tile
    assert npad % TN == 0
    logits = pl.pallas_call(
        _decoder_kernel,
        grid=(npad // TN,),
        in_specs=[pl.BlockSpec((M, d), lambda j: (0, 0)),
                  pl.BlockSpec((d, TN), lambda j: (0, j)),
                  pl.BlockSpec((1, TN), lambda j: (0, j))],
        out_specs=pl.BlockSpec((M, TN), lambda j: (0, j)),
        out_shape=jax.ShapeDtypeStruct((M, npad), jnp.float32),
        compiler_params=pltpu.CompilerParams(dimension_semantics=("parallel",)),
    )(y2, hp["wd"], hp["bd"])

    return logits.reshape(B, P, npad)[:, :, :ntokens]


# ----------------------------- model setup -------------------------------------

def init_params(key, ntokens, emb_dim, hidden_dim, nhead, nlayers, max_len=512):
    d = emb_dim * 2
    # The PyTorch module applies LayerNorm(hidden_dim) to (…, emb_dim*2) activations,
    # which only broadcasts if hidden_dim == emb_dim*2 — enforce it here.
    assert hidden_dim == d, "hidden_dim must equal emb_dim*2 for the final LayerNorm"
    assert d % nhead == 0
    dff = hidden_dim                        # dim_feedforward of TransformerEncoderLayer

    def nrm(k, shape, dtype=jnp.bfloat16):
        return (0.02 * jax.random.normal(k, shape)).astype(dtype)

    keys = list(jax.random.split(key, 4 * nlayers + 3))
    params = {"ntokens": ntokens}
    params["emb"] = nrm(keys.pop(), (ntokens, d), jnp.float32)

    # Sinusoidal positional encoding (matches the PositionalEncoding buffer).
    position = jnp.arange(max_len, dtype=jnp.float32)[:, None]
    div_term = jnp.exp(jnp.arange(0, d, 2, dtype=jnp.float32) * (-math.log(10000.0) / d))
    pe = jnp.zeros((max_len, d), jnp.float32)
    pe = pe.at[:, 0::2].set(jnp.sin(position * div_term))
    pe = pe.at[:, 1::2].set(jnp.cos(position * div_term))
    params["pe"] = pe[None]                                   # (1, max_len, d)

    acc = {k: [] for k in ("wq", "wk", "wv", "bq", "bk", "bv", "wo", "bo",
                           "ln1g", "ln1b", "w1", "b1", "w2", "b2", "ln2g", "ln2b")}
    for _ in range(nlayers):
        wqkv = nrm(keys.pop(), (d, 3 * d))      # y = x @ W, (in, out) layout, bf16
        acc["wq"].append(wqkv[:, 0 * d:1 * d])
        acc["wk"].append(wqkv[:, 1 * d:2 * d])
        acc["wv"].append(wqkv[:, 2 * d:3 * d])
        for b in ("bq", "bk", "bv"):
            acc[b].append(jnp.zeros((1, d), jnp.float32))
        acc["wo"].append(nrm(keys.pop(), (d, d)))   # heads concatenated along rows
        acc["bo"].append(jnp.zeros((1, d), jnp.float32))
        acc["ln1g"].append(jnp.ones((1, d), jnp.float32))
        acc["ln1b"].append(jnp.zeros((1, d), jnp.float32))
        acc["w1"].append(nrm(keys.pop(), (d, dff)))
        acc["b1"].append(jnp.zeros((1, dff), jnp.float32))
        acc["w2"].append(nrm(keys.pop(), (dff, d)))
        acc["b2"].append(jnp.zeros((1, d), jnp.float32))
        acc["ln2g"].append(jnp.ones((1, d), jnp.float32))
        acc["ln2b"].append(jnp.zeros((1, d), jnp.float32))
    params["stacked"] = {k: jnp.stack(v, axis=0) for k, v in acc.items()}

    # Masked-LM head; decoder padded to a lane-dense (multiple of 128) output width.
    npad = ((ntokens + 127) // 128) * 128
    wd = nrm(keys.pop(), (d, ntokens))
    params["head"] = {
        "wl": nrm(keys.pop(), (d, d)),
        "bl": jnp.zeros((1, d), jnp.float32),
        "ng": jnp.ones((1, hidden_dim), jnp.float32),
        "nb": jnp.zeros((1, hidden_dim), jnp.float32),
        "wd": jnp.pad(wd, ((0, 0), (0, npad - ntokens))),
        "bd": jnp.zeros((1, npad), jnp.float32),
    }
    return params


# ----------------------------- demo ---------------------------------------------

if __name__ == "__main__":
    # TODO(synk): training-mode dropout not implemented (eval-mode identity only).
    ntokens, emb_dim, hidden_dim, nhead, nlayers = 64, 16, 32, 2, 2
    B, S, P = 2, 8, 4

    root = jax.random.PRNGKey(0)
    kp, ks, km = jax.random.split(root, 3)

    params = init_params(kp, ntokens, emb_dim, hidden_dim, nhead, nlayers)

    src = jax.random.randint(ks, (B, S), 0, ntokens, dtype=jnp.int32)
    src_mask = jnp.zeros((B, S), dtype=bool).at[:, S - 2:].set(True)   # pad last 2 keys
    masked_pos = jax.random.randint(km, (B, P), 0, S - 2, dtype=jnp.int32)

    out = trajectory_transformer_forward(params, src, src_mask, masked_pos, nhead)
    out = jax.block_until_ready(out)
    assert out.shape == (B, P, ntokens), out.shape
    assert bool(jnp.all(jnp.isfinite(out)))
    print("KERNEL_OK")
</pallas_src>

<mosaic_0001>
module attributes {stable_mosaic.version = 11 : i64} {
  func.func @_encoder_kernel(%arg0: i32, %arg1: i32, %arg2: memref<1x8x32xf32, #tpu.memory_space<vmem>>, %arg3: memref<2x1x8xf32, #tpu.memory_space<vmem>>, %arg4: memref<1x4x8xbf16, #tpu.memory_space<vmem>>, %arg5: memref<1x32x32xbf16, #tpu.memory_space<vmem>>, %arg6: memref<1x32x32xbf16, #tpu.memory_space<vmem>>, %arg7: memref<1x32x32xbf16, #tpu.memory_space<vmem>>, %arg8: memref<1x1x32xf32, #tpu.memory_space<vmem>>, %arg9: memref<1x1x32xf32, #tpu.memory_space<vmem>>, %arg10: memref<1x1x32xf32, #tpu.memory_space<vmem>>, %arg11: memref<1x32x32xbf16, #tpu.memory_space<vmem>>, %arg12: memref<1x1x32xf32, #tpu.memory_space<vmem>>, %arg13: memref<1x1x32xf32, #tpu.memory_space<vmem>>, %arg14: memref<1x1x32xf32, #tpu.memory_space<vmem>>, %arg15: memref<1x32x32xbf16, #tpu.memory_space<vmem>>, %arg16: memref<1x1x32xf32, #tpu.memory_space<vmem>>, %arg17: memref<1x32x32xbf16, #tpu.memory_space<vmem>>, %arg18: memref<1x1x32xf32, #tpu.memory_space<vmem>>, %arg19: memref<1x1x32xf32, #tpu.memory_space<vmem>>, %arg20: memref<1x1x32xf32, #tpu.memory_space<vmem>>, %arg21: memref<32x32xbf16, #tpu.memory_space<vmem>>, %arg22: memref<1x32xf32, #tpu.memory_space<vmem>>, %arg23: memref<1x32xf32, #tpu.memory_space<vmem>>, %arg24: memref<1x32xf32, #tpu.memory_space<vmem>>, %arg25: memref<1x4x32xf32, #tpu.memory_space<vmem>>, %arg26: memref<8x32xf32, #tpu.memory_space<vmem>>) attributes {dimension_semantics = [#tpu.dimension_semantics<parallel>, #tpu.dimension_semantics<arbitrary>], iteration_bounds = array<i64: 2, 2>, scalar_prefetch = 0 : i64, scratch_operands = 1 : i64, tpu.core_type = #tpu.core_type<tc>, window_params = [{transform_indices = @transform_0, window_bounds = array<i64: 1, 8, 32>}, {transform_indices = @transform_1, window_bounds = array<i64: 2, 1, 8>}, {transform_indices = @transform_2, window_bounds = array<i64: 1, 4, 8>}, {transform_indices = @transform_3, window_bounds = array<i64: 1, 32, 32>}, {transform_indices = @transform_4, window_bounds = array<i64: 1, 32, 32>}, {transform_indices = @transform_5, window_bounds = array<i64: 1, 32, 32>}, {transform_indices = @transform_6, window_bounds = array<i64: 1, 1, 32>}, {transform_indices = @transform_7, window_bounds = array<i64: 1, 1, 32>}, {transform_indices = @transform_8, window_bounds = array<i64: 1, 1, 32>}, {transform_indices = @transform_9, window_bounds = array<i64: 1, 32, 32>}, {transform_indices = @transform_10, window_bounds = array<i64: 1, 1, 32>}, {transform_indices = @transform_11, window_bounds = array<i64: 1, 1, 32>}, {transform_indices = @transform_12, window_bounds = array<i64: 1, 1, 32>}, {transform_indices = @transform_13, window_bounds = array<i64: 1, 32, 32>}, {transform_indices = @transform_14, window_bounds = array<i64: 1, 1, 32>}, {transform_indices = @transform_15, window_bounds = array<i64: 1, 32, 32>}, {transform_indices = @transform_16, window_bounds = array<i64: 1, 1, 32>}, {transform_indices = @transform_17, window_bounds = array<i64: 1, 1, 32>}, {transform_indices = @transform_18, window_bounds = array<i64: 1, 1, 32>}, {pipeline_mode = #tpu.pipeline_mode<synchronous>, transform_indices = @transform_19, window_bounds = array<i64: 32, 32>}, {pipeline_mode = #tpu.pipeline_mode<synchronous>, transform_indices = @transform_20, window_bounds = array<i64: 1, 32>}, {pipeline_mode = #tpu.pipeline_mode<synchronous>, transform_indices = @transform_21, window_bounds = array<i64: 1, 32>}, {pipeline_mode = #tpu.pipeline_mode<synchronous>, transform_indices = @transform_22, window_bounds = array<i64: 1, 32>}, {transform_indices = @transform_23, window_bounds = array<i64: 1, 4, 32>}]} {
    %c0_i32 = arith.constant 0 : i32
    %0 = arith.cmpi eq, %arg1, %c0_i32 : i32
    %1 = arith.extui %0 : i1 to i32
    %c0_i32_0 = arith.constant 0 : i32
    %2 = arith.cmpi ne, %1, %c0_i32_0 : i32
    scf.if %2 {
      %c0_79 = arith.constant 0 : index
      %c0_80 = arith.constant 0 : index
      %c0_81 = arith.constant 0 : index
      %147 = vector.load %arg2[%c0_79, %c0_80, %c0_81] : memref<1x8x32xf32, #tpu.memory_space<vmem>>, vector<1x8x32xf32>
      %148 = vector.shape_cast %147 : vector<1x8x32xf32> to vector<8x32xf32>
      %c0_82 = arith.constant 0 : index
      %c0_83 = arith.constant 0 : index
      %149 = vector.load %arg26[%c0_82, %c0_83] : memref<8x32xf32, #tpu.memory_space<vmem>>, vector<8x32xf32>
      tpu.vector_store %arg26[%c0_82, %c0_83], %148 {strides = array<i32>} : memref<8x32xf32, #tpu.memory_space<vmem>>, vector<8x32xf32>,
    } else {
    }
    %c0 = arith.constant 0 : index
    %c0_1 = arith.constant 0 : index
    %3 = vector.load %arg26[%c0, %c0_1] : memref<8x32xf32, #tpu.memory_space<vmem>>, vector<8x32xf32>
    %4 = arith.truncf %3 : vector<8x32xf32> to vector<8x32xbf16>
    %c0_2 = arith.constant 0 : index
    %c0_3 = arith.constant 0 : index
    %c0_4 = arith.constant 0 : index
    %5 = vector.load %arg5[%c0_2, %c0_3, %c0_4] : memref<1x32x32xbf16, #tpu.memory_space<vmem>>, vector<1x32x32xbf16>
    %6 = vector.shape_cast %5 : vector<1x32x32xbf16> to vector<32x32xbf16>
    %cst = arith.constant dense<0.000000e+00> : vector<8x32xf32>
    %7 = tpu.matmul %4, %6, %cst {dimension_numbers = #tpu.dot_dimension_numbers<[1], [0], [0], [1], [0, 0, 1, 1], [], []>} : vector<8x32xbf16>, vector<32x32xbf16>, vector<8x32xf32> -> vector<8x32xf32>
    %c0_5 = arith.constant 0 : index
    %c0_6 = arith.constant 0 : index
    %c0_7 = arith.constant 0 : index
    %8 = vector.load %arg8[%c0_5, %c0_6, %c0_7] : memref<1x1x32xf32, #tpu.memory_space<vmem>>, vector<1x1x32xf32>
    %9 = vector.shape_cast %8 : vector<1x1x32xf32> to vector<1x32xf32>
    %10 = vector.broadcast %9 : vector<1x32xf32> to vector<8x32xf32>
    %11 = arith.addf %7, %10 : vector<8x32xf32>
    %c0_8 = arith.constant 0 : index
    %c0_9 = arith.constant 0 : index
    %c0_10 = arith.constant 0 : index
    %12 = vector.load %arg6[%c0_8, %c0_9, %c0_10] : memref<1x32x32xbf16, #tpu.memory_space<vmem>>, vector<1x32x32xbf16>
    %13 = vector.shape_cast %12 : vector<1x32x32xbf16> to vector<32x32xbf16>
    %cst_11 = arith.constant dense<0.000000e+00> : vector<8x32xf32>
    %14 = tpu.matmul %4, %13, %cst_11 {dimension_numbers = #tpu.dot_dimension_numbers<[1], [0], [0], [1], [0, 0, 1, 1], [], []>} : vector<8x32xbf16>, vector<32x32xbf16>, vector<8x32xf32> -> vector<8x32xf32>
    %c0_12 = arith.constant 0 : index
    %c0_13 = arith.constant 0 : index
    %c0_14 = arith.constant 0 : index
    %15 = vector.load %arg9[%c0_12, %c0_13, %c0_14] : memref<1x1x32xf32, #tpu.memory_space<vmem>>, vector<1x1x32xf32>
    %16 = vector.shape_cast %15 : vector<1x1x32xf32> to vector<1x32xf32>
    %17 = vector.broadcast %16 : vector<1x32xf32> to vector<8x32xf32>
    %18 = arith.addf %14, %17 : vector<8x32xf32>
    %c0_15 = arith.constant 0 : index
    %c0_16 = arith.constant 0 : index
    %c0_17 = arith.constant 0 : index
    %19 = vector.load %arg7[%c0_15, %c0_16, %c0_17] : memref<1x32x32xbf16, #tpu.memory_space<vmem>>, vector<1x32x32xbf16>
    %20 = vector.shape_cast %19 : vector<1x32x32xbf16> to vector<32x32xbf16>
    %cst_18 = arith.constant dense<0.000000e+00> : vector<8x32xf32>
    %21 = tpu.matmul %4, %20, %cst_18 {dimension_numbers = #tpu.dot_dimension_numbers<[1], [0], [0], [1], [0, 0, 1, 1], [], []>} : vector<8x32xbf16>, vector<32x32xbf16>, vector<8x32xf32> -> vector<8x32xf32>
    %c0_19 = arith.constant 0 : index
    %c0_20 = arith.constant 0 : index
    %c0_21 = arith.constant 0 : index
    %22 = vector.load %arg10[%c0_19, %c0_20, %c0_21] : memref<1x1x32xf32, #tpu.memory_space<vmem>>, vector<1x1x32xf32>
    %23 = vector.shape_cast %22 : vector<1x1x32xf32> to vector<1x32xf32>
    %24 = vector.broadcast %23 : vector<1x32xf32> to vector<8x32xf32>
    %25 = arith.addf %21, %24 : vector<8x32xf32>
    %26 = vector.shape_cast %11 : vector<8x32xf32> to vector<1x8x2x16xf32>
    %27 = tpu.transpose %26, [0, 2, 1, 3] : vector<1x8x2x16xf32> -> vector<1x2x8x16xf32>
    %28 = vector.shape_cast %27 : vector<1x2x8x16xf32> to vector<2x8x16xf32>
    %29 = arith.truncf %28 : vector<2x8x16xf32> to vector<2x8x16xbf16>
    %30 = vector.shape_cast %18 : vector<8x32xf32> to vector<1x8x2x16xf32>
    %31 = tpu.transpose %30, [0, 2, 1, 3] : vector<1x8x2x16xf32> -> vector<1x2x8x16xf32>
    %32 = vector.shape_cast %31 : vector<1x2x8x16xf32> to vector<2x8x16xf32>
    %33 = arith.truncf %32 : vector<2x8x16xf32> to vector<2x8x16xbf16>
    %34 = vector.shape_cast %25 : vector<8x32xf32> to vector<1x8x2x16xf32>
    %35 = tpu.transpose %34, [0, 2, 1, 3] : vector<1x8x2x16xf32> -> vector<1x2x8x16xf32>
    %36 = vector.shape_cast %35 : vector<1x2x8x16xf32> to vector<2x8x16xf32>
    %37 = arith.truncf %36 : vector<2x8x16xf32> to vector<2x8x16xbf16>
    "tpu.trace_start"() <{level = 10 : i32, message = "bqe,bke->bqk"}> : () -> ()
    %cst_22 = arith.constant dense<0.000000e+00> : vector<2x8x8xf32>
    %38 = tpu.matmul %29, %33, %cst_22 {dimension_numbers = #tpu.dot_dimension_numbers<[2], [2], [1], [1], [0, 0, 0, 1, 1, 1], [0], [0]>} : vector<2x8x16xbf16>, vector<2x8x16xbf16>, vector<2x8x8xf32> -> vector<2x8x8xf32>
    "tpu.trace_stop"() : () -> ()
    %cst_23 = arith.constant 2.500000e-01 : f32
    %39 = vector.broadcast %cst_23 : f32 to vector<2x8x8xf32>
    %40 = arith.mulf %38, %39 : vector<2x8x8xf32>
    %c0_24 = arith.constant 0 : index
    %c0_25 = arith.constant 0 : index
    %c0_26 = arith.constant 0 : index
    %41 = vector.load %arg3[%c0_24, %c0_25, %c0_26] : memref<2x1x8xf32, #tpu.memory_space<vmem>>, vector<2x1x8xf32>
    %42 = vector.broadcast %41 : vector<2x1x8xf32> to vector<2x8x8xf32>
    %43 = arith.addf %40, %42 : vector<2x8x8xf32>
    %cst_27 = arith.constant dense<0xFF800000> : vector<2x8xf32>
    %44 = vector.multi_reduction <maximumf>, %43, %cst_27 [2] : vector<2x8x8xf32> to vector<2x8xf32>
    %45 = vector.shape_cast %44 : vector<2x8xf32> to vector<2x8x1xf32>
    %46 = vector.broadcast %45 : vector<2x8x1xf32> to vector<2x8x8xf32>
    %47 = arith.subf %43, %46 : vector<2x8x8xf32>
    %48 = math.exp %47 : vector<2x8x8xf32>
    %cst_28 = arith.constant dense<0.000000e+00> : vector<2x8xf32>
    %49 = vector.multi_reduction <add>, %48, %cst_28 [2] : vector<2x8x8xf32> to vector<2x8xf32>
    %50 = vector.shape_cast %49 : vector<2x8xf32> to vector<2x8x1xf32>
    %51 = tpu.reciprocal %50 {approx = true} : vector<2x8x1xf32> -> vector<2x8x1xf32>
    %52 = vector.broadcast %51 : vector<2x8x1xf32> to vector<2x8x8xf32>
    %53 = arith.mulf %48, %52 : vector<2x8x8xf32>
    %54 = arith.truncf %53 : vector<2x8x8xf32> to vector<2x8x8xbf16>
    "tpu.trace_start"() <{level = 10 : i32, message = "bqk,bke->bqe"}> : () -> ()
    %cst_29 = arith.constant dense<0.000000e+00> : vector<2x8x16xf32>
    %55 = tpu.matmul %54, %37, %cst_29 {dimension_numbers = #tpu.dot_dimension_numbers<[2], [1], [1], [2], [0, 0, 0, 1, 1, 2], [0], [0]>} : vector<2x8x8xbf16>, vector<2x8x16xbf16>, vector<2x8x16xf32> -> vector<2x8x16xf32>
    "tpu.trace_stop"() : () -> ()
    %56 = vector.shape_cast %55 : vector<2x8x16xf32> to vector<1x2x8x16xf32>
    %57 = tpu.transpose %56, [0, 2, 1, 3] : vector<1x2x8x16xf32> -> vector<1x8x2x16xf32>
    %58 = vector.shape_cast %57 : vector<1x8x2x16xf32> to vector<8x32xf32>
    %59 = arith.truncf %58 : vector<8x32xf32> to vector<8x32xbf16>
    %c0_30 = arith.constant 0 : index
    %c0_31 = arith.constant 0 : index
    %c0_32 = arith.constant 0 : index
    %60 = vector.load %arg11[%c0_30, %c0_31, %c0_32] : memref<1x32x32xbf16, #tpu.memory_space<vmem>>, vector<1x32x32xbf16>
    %61 = vector.shape_cast %60 : vector<1x32x32xbf16> to vector<32x32xbf16>
    %cst_33 = arith.constant dense<0.000000e+00> : vector<8x32xf32>
    %62 = tpu.matmul %59, %61, %cst_33 {dimension_numbers = #tpu.dot_dimension_numbers<[1], [0], [0], [1], [0, 0, 1, 1], [], []>} : vector<8x32xbf16>, vector<32x32xbf16>, vector<8x32xf32> -> vector<8x32xf32>
    %c0_34 = arith.constant 0 : index
    %c0_35 = arith.constant 0 : index
    %c0_36 = arith.constant 0 : index
    %63 = vector.load %arg12[%c0_34, %c0_35, %c0_36] : memref<1x1x32xf32, #tpu.memory_space<vmem>>, vector<1x1x32xf32>
    %64 = vector.shape_cast %63 : vector<1x1x32xf32> to vector<1x32xf32>
    %65 = vector.broadcast %64 : vector<1x32xf32> to vector<8x32xf32>
    %66 = arith.addf %62, %65 : vector<8x32xf32>
    %67 = arith.addf %3, %66 : vector<8x32xf32>
    %c0_37 = arith.constant 0 : index
    %c0_38 = arith.constant 0 : index
    %c0_39 = arith.constant 0 : index
    %68 = vector.load %arg13[%c0_37, %c0_38, %c0_39] : memref<1x1x32xf32, #tpu.memory_space<vmem>>, vector<1x1x32xf32>
    %69 = vector.shape_cast %68 : vector<1x1x32xf32> to vector<1x32xf32>
    %c0_40 = arith.constant 0 : index
    %c0_41 = arith.constant 0 : index
    %c0_42 = arith.constant 0 : index
    %70 = vector.load %arg14[%c0_40, %c0_41, %c0_42] : memref<1x1x32xf32, #tpu.memory_space<vmem>>, vector<1x1x32xf32>
    %71 = vector.shape_cast %70 : vector<1x1x32xf32> to vector<1x32xf32>
    %cst_43 = arith.constant dense<0.000000e+00> : vector<8xf32>
    %72 = vector.multi_reduction <add>, %67, %cst_43 [1] : vector<8x32xf32> to vector<8xf32>
    %73 = vector.shape_cast %72 : vector<8xf32> to vector<8x1xf32>
    %cst_44 = arith.constant 3.200000e+01 : f32
    %74 = vector.broadcast %cst_44 : f32 to vector<8x1xf32>
    %75 = arith.divf %73, %74 : vector<8x1xf32>
    %76 = arith.mulf %67, %67 : vector<8x32xf32>
    %cst_45 = arith.constant dense<0.000000e+00> : vector<8xf32>
    %77 = vector.multi_reduction <add>, %76, %cst_45 [1] : vector<8x32xf32> to vector<8xf32>
    %78 = vector.shape_cast %77 : vector<8xf32> to vector<8x1xf32>
    %cst_46 = arith.constant 3.200000e+01 : f32
    %79 = vector.broadcast %cst_46 : f32 to vector<8x1xf32>
    %80 = arith.divf %78, %79 : vector<8x1xf32>
    %81 = arith.mulf %75, %75 : vector<8x1xf32>
    %82 = arith.subf %80, %81 : vector<8x1xf32>
    %cst_47 = arith.constant 0.000000e+00 : f32
    %83 = vector.broadcast %cst_47 : f32 to vector<8x1xf32>
    %84 = arith.maximumf %82, %83 : vector<8x1xf32>
    %85 = vector.broadcast %75 : vector<8x1xf32> to vector<8x32xf32>
    %86 = arith.subf %67, %85 : vector<8x32xf32>
    %cst_48 = arith.constant 9.99999974E-6 : f32
    %87 = vector.broadcast %cst_48 : f32 to vector<8x1xf32>
    %88 = arith.addf %84, %87 : vector<8x1xf32>
    %89 = math.rsqrt %88 : vector<8x1xf32>
    %90 = vector.broadcast %89 : vector<8x1xf32> to vector<8x32xf32>
    %91 = arith.mulf %86, %90 : vector<8x32xf32>
    %92 = vector.broadcast %69 : vector<1x32xf32> to vector<8x32xf32>
    %93 = arith.mulf %92, %91 : vector<8x32xf32>
    %94 = vector.broadcast %71 : vector<1x32xf32> to vector<8x32xf32>
    %95 = arith.addf %93, %94 : vector<8x32xf32>
    %96 = arith.truncf %95 : vector<8x32xf32> to vector<8x32xbf16>
    %c0_49 = arith.constant 0 : index
    %c0_50 = arith.constant 0 : index
    %c0_51 = arith.constant 0 : index
    %97 = vector.load %arg15[%c0_49, %c0_50, %c0_51] : memref<1x32x32xbf16, #tpu.memory_space<vmem>>, vector<1x32x32xbf16>
    %98 = vector.shape_cast %97 : vector<1x32x32xbf16> to vector<32x32xbf16>
    %cst_52 = arith.constant dense<0.000000e+00> : vector<8x32xf32>
    %99 = tpu.matmul %96, %98, %cst_52 {dimension_numbers = #tpu.dot_dimension_numbers<[1], [0], [0], [1], [0, 0, 1, 1], [], []>} : vector<8x32xbf16>, vector<32x32xbf16>, vector<8x32xf32> -> vector<8x32xf32>
    %c0_53 = arith.constant 0 : index
    %c0_54 = arith.constant 0 : index
    %c0_55 = arith.constant 0 : index
    %100 = vector.load %arg16[%c0_53, %c0_54, %c0_55] : memref<1x1x32xf32, #tpu.memory_space<vmem>>, vector<1x1x32xf32>
    %101 = vector.shape_cast %100 : vector<1x1x32xf32> to vector<1x32xf32>
    %102 = vector.broadcast %101 : vector<1x32xf32> to vector<8x32xf32>
    %103 = arith.addf %99, %102 : vector<8x32xf32>
    %cst_56 = arith.constant 0.000000e+00 : f32
    %104 = vector.broadcast %cst_56 : f32 to vector<8x32xf32>
    %105 = arith.maximumf %103, %104 : vector<8x32xf32>
    %106 = arith.truncf %105 : vector<8x32xf32> to vector<8x32xbf16>
    %c0_57 = arith.constant 0 : index
    %c0_58 = arith.constant 0 : index
    %c0_59 = arith.constant 0 : index
    %107 = vector.load %arg17[%c0_57, %c0_58, %c0_59] : memref<1x32x32xbf16, #tpu.memory_space<vmem>>, vector<1x32x32xbf16>
    %108 = vector.shape_cast %107 : vector<1x32x32xbf16> to vector<32x32xbf16>
    %cst_60 = arith.constant dense<0.000000e+00> : vector<8x32xf32>
    %109 = tpu.matmul %106, %108, %cst_60 {dimension_numbers = #tpu.dot_dimension_numbers<[1], [0], [0], [1], [0, 0, 1, 1], [], []>} : vector<8x32xbf16>, vector<32x32xbf16>, vector<8x32xf32> -> vector<8x32xf32>
    %c0_61 = arith.constant 0 : index
    %c0_62 = arith.constant 0 : index
    %c0_63 = arith.constant 0 : index
    %110 = vector.load %arg18[%c0_61, %c0_62, %c0_63] : memref<1x1x32xf32, #tpu.memory_space<vmem>>, vector<1x1x32xf32>
    %111 = vector.shape_cast %110 : vector<1x1x32xf32> to vector<1x32xf32>
    %112 = vector.broadcast %111 : vector<1x32xf32> to vector<8x32xf32>
    %113 = arith.addf %109, %112 : vector<8x32xf32>
    %114 = arith.addf %95, %113 : vector<8x32xf32>
    %c0_64 = arith.constant 0 : index
    %c0_65 = arith.constant 0 : index
    %c0_66 = arith.constant 0 : index
    %115 = vector.load %arg19[%c0_64, %c0_65, %c0_66] : memref<1x1x32xf32, #tpu.memory_space<vmem>>, vector<1x1x32xf32>
    %116 = vector.shape_cast %115 : vector<1x1x32xf32> to vector<1x32xf32>
    %c0_67 = arith.constant 0 : index
    %c0_68 = arith.constant 0 : index
    %c0_69 = arith.constant 0 : index
    %117 = vector.load %arg20[%c0_67, %c0_68, %c0_69] : memref<1x1x32xf32, #tpu.memory_space<vmem>>, vector<1x1x32xf32>
    %118 = vector.shape_cast %117 : vector<1x1x32xf32> to vector<1x32xf32>
    %cst_70 = arith.constant dense<0.000000e+00> : vector<8xf32>
    %119 = vector.multi_reduction <add>, %114, %cst_70 [1] : vector<8x32xf32> to vector<8xf32>
    %120 = vector.shape_cast %119 : vector<8xf32> to vector<8x1xf32>
    %cst_71 = arith.constant 3.200000e+01 : f32
    %121 = vector.broadcast %cst_71 : f32 to vector<8x1xf32>
    %122 = arith.divf %120, %121 : vector<8x1xf32>
    %123 = arith.mulf %114, %114 : vector<8x32xf32>
    %cst_72 = arith.constant dense<0.000000e+00> : vector<8xf32>
    %124 = vector.multi_reduction <add>, %123, %cst_72 [1] : vector<8x32xf32> to vector<8xf32>
    %125 = vector.shape_cast %124 : vector<8xf32> to vector<8x1xf32>
    %cst_73 = arith.constant 3.200000e+01 : f32
    %126 = vector.broadcast %cst_73 : f32 to vector<8x1xf32>
    %127 = arith.divf %125, %126 : vector<8x1xf32>
    %128 = arith.mulf %122, %122 : vector<8x1xf32>
    %129 = arith.subf %127, %128 : vector<8x1xf32>
    %cst_74 = arith.constant 0.000000e+00 : f32
    %130 = vector.broadcast %cst_74 : f32 to vector<8x1xf32>
    %131 = arith.maximumf %129, %130 : vector<8x1xf32>
    %132 = vector.broadcast %122 : vector<8x1xf32> to vector<8x32xf32>
    %133 = arith.subf %114, %132 : vector<8x32xf32>
    %cst_75 = arith.constant 9.99999974E-6 : f32
    %134 = vector.broadcast %cst_75 : f32 to vector<8x1xf32>
    %135 = arith.addf %131, %134 : vector<8x1xf32>
    %136 = math.rsqrt %135 : vector<8x1xf32>
    %137 = vector.broadcast %136 : vector<8x1xf32> to vector<8x32xf32>
    %138 = arith.mulf %133, %137 : vector<8x32xf32>
    %139 = vector.broadcast %116 : vector<1x32xf32> to vector<8x32xf32>
    %140 = arith.mulf %139, %138 : vector<8x32xf32>
    %141 = vector.broadcast %118 : vector<1x32xf32> to vector<8x32xf32>
    %142 = arith.addf %140, %141 : vector<8x32xf32>
    %c0_76 = arith.constant 0 : index
    %c0_77 = arith.constant 0 : index
    %143 = vector.load %arg26[%c0_76, %c0_77] : memref<8x32xf32, #tpu.memory_space<vmem>>, vector<8x32xf32>
    tpu.vector_store %arg26[%c0_76, %c0_77], %142 {strides = array<i32>} : memref<8x32xf32, #tpu.memory_space<vmem>>, vector<8x32xf32>,
    %c1_i32 = arith.constant 1 : i32
    %144 = arith.cmpi eq, %arg1, %c1_i32 : i32
    %145 = arith.extui %144 : i1 to i32
    %c0_i32_78 = arith.constant 0 : i32
    %146 = arith.cmpi ne, %145, %c0_i32_78 : i32
    scf.if %146 {
      %c0_79 = arith.constant 0 : index
      %c0_80 = arith.constant 0 : index
      %147 = vector.load %arg26[%c0_79, %c0_80] : memref<8x32xf32, #tpu.memory_space<vmem>>, vector<8x32xf32>
      %148 = vector.shape_cast %147 : vector<8x32xf32> to vector<1x8x32xf32>
      %c0_81 = arith.constant 0 : index
      %c0_82 = arith.constant 0 : index
      %c0_83 = arith.constant 0 : index
      %149 = vector.load %arg4[%c0_81, %c0_82, %c0_83] : memref<1x4x8xbf16, #tpu.memory_space<vmem>>, vector<1x4x8xbf16>
      %150 = arith.extf %149 : vector<1x4x8xbf16> to vector<1x4x8xf32>
      "tpu.trace_start"() <{level = 10 : i32, message = "bps,bsd->bpd"}> : () -> ()
      %cst_84 = arith.constant dense<0.000000e+00> : vector<1x4x32xf32>
      %151 = tpu.matmul %150, %148, %cst_84 {dimension_numbers = #tpu.dot_dimension_numbers<[2], [1], [1], [2], [0, 0, 0, 1, 1, 2], [0], [0]>} : vector<1x4x8xf32>, vector<1x8x32xf32>, vector<1x4x32xf32> -> vector<1x4x32xf32>
      "tpu.trace_stop"() : () -> ()
      %152 = vector.shape_cast %151 : vector<1x4x32xf32> to vector<4x32xf32>
      %153 = arith.truncf %152 : vector<4x32xf32> to vector<4x32xbf16>
      %c0_85 = arith.constant 0 : index
      %c0_86 = arith.constant 0 : index
      %154 = vector.load %arg21[%c0_85, %c0_86] : memref<32x32xbf16, #tpu.memory_space<vmem>>, vector<32x32xbf16>
      %cst_87 = arith.constant dense<0.000000e+00> : vector<4x32xf32>
      %155 = tpu.matmul %153, %154, %cst_87 {dimension_numbers = #tpu.dot_dimension_numbers<[1], [0], [0], [1], [0, 0, 1, 1], [], []>} : vector<4x32xbf16>, vector<32x32xbf16>, vector<4x32xf32> -> vector<4x32xf32>
      %c0_88 = arith.constant 0 : index
      %c0_89 = arith.constant 0 : index
      %156 = vector.load %arg22[%c0_88, %c0_89] : memref<1x32xf32, #tpu.memory_space<vmem>>, vector<1x32xf32>
      %157 = vector.broadcast %156 : vector<1x32xf32> to vector<4x32xf32>
      %158 = arith.addf %155, %157 : vector<4x32xf32>
      %cst_90 = arith.constant 5.000000e-01 : f32
      %159 = vector.broadcast %cst_90 : f32 to vector<4x32xf32>
      %160 = arith.mulf %158, %159 : vector<4x32xf32>
      %cst_91 = arith.constant 1.41421354 : f32
      %161 = vector.broadcast %cst_91 : f32 to vector<4x32xf32>
      %162 = arith.divf %158, %161 : vector<4x32xf32>
      %163 = math.erf %162 : vector<4x32xf32>
      %cst_92 = arith.constant 1.000000e+00 : f32
      %164 = vector.broadcast %cst_92 : f32 to vector<4x32xf32>
      %165 = arith.addf %164, %163 : vector<4x32xf32>
      %166 = arith.mulf %160, %165 : vector<4x32xf32>
      %c0_93 = arith.constant 0 : index
      %c0_94 = arith.constant 0 : index
      %167 = vector.load %arg23[%c0_93, %c0_94] : memref<1x32xf32, #tpu.memory_space<vmem>>, vector<1x32xf32>
      %c0_95 = arith.constant 0 : index
      %c0_96 = arith.constant 0 : index
      %168 = vector.load %arg24[%c0_95, %c0_96] : memref<1x32xf32, #tpu.memory_space<vmem>>, vector<1x32xf32>
      %cst_97 = arith.constant dense<0.000000e+00> : vector<4xf32>
      %169 = vector.multi_reduction <add>, %166, %cst_97 [1] : vector<4x32xf32> to vector<4xf32>
      %170 = vector.shape_cast %169 : vector<4xf32> to vector<4x1xf32>
      %cst_98 = arith.constant 3.200000e+01 : f32
      %171 = vector.broadcast %cst_98 : f32 to vector<4x1xf32>
      %172 = arith.divf %170, %171 : vector<4x1xf32>
      %173 = arith.mulf %166, %166 : vector<4x32xf32>
      %cst_99 = arith.constant dense<0.000000e+00> : vector<4xf32>
      %174 = vector.multi_reduction <add>, %173, %cst_99 [1] : vector<4x32xf32> to vector<4xf32>
      %175 = vector.shape_cast %174 : vector<4xf32> to vector<4x1xf32>
      %cst_100 = arith.constant 3.200000e+01 : f32
      %176 = vector.broadcast %cst_100 : f32 to vector<4x1xf32>
      %177 = arith.divf %175, %176 : vector<4x1xf32>
      %178 = arith.mulf %172, %172 : vector<4x1xf32>
      %179 = arith.subf %177, %178 : vector<4x1xf32>
      %cst_101 = arith.constant 0.000000e+00 : f32
      %180 = vector.broadcast %cst_101 : f32 to vector<4x1xf32>
      %181 = arith.maximumf %179, %180 : vector<4x1xf32>
      %182 = vector.broadcast %172 : vector<4x1xf32> to vector<4x32xf32>
      %183 = arith.subf %166, %182 : vector<4x32xf32>
      %cst_102 = arith.constant 9.99999996E-13 : f32
      %184 = vector.broadcast %cst_102 : f32 to vector<4x1xf32>
      %185 = arith.addf %181, %184 : vector<4x1xf32>
      %186 = math.rsqrt %185 : vector<4x1xf32>
      %187 = vector.broadcast %186 : vector<4x1xf32> to vector<4x32xf32>
      %188 = arith.mulf %183, %187 : vector<4x32xf32>
      %189 = vector.broadcast %167 : vector<1x32xf32> to vector<4x32xf32>
      %190 = arith.mulf %189, %188 : vector<4x32xf32>
      %191 = vector.broadcast %168 : vector<1x32xf32> to vector<4x32xf32>
      %192 = arith.addf %190, %191 : vector<4x32xf32>
      %193 = vector.shape_cast %192 : vector<4x32xf32> to vector<1x4x32xf32>
      %c0_103 = arith.constant 0 : index
      %c0_104 = arith.constant 0 : index
      %c0_105 = arith.constant 0 : index
      %194 = vector.load %arg25[%c0_103, %c0_104, %c0_105] : memref<1x4x32xf32, #tpu.memory_space<vmem>>, vector<1x4x32xf32>
      tpu.vector_store %arg25[%c0_103, %c0_104, %c0_105], %193 {strides = array<i32>} : memref<1x4x32xf32, #tpu.memory_space<vmem>>, vector<1x4x32xf32>,
    } else {
    }
    return
  }
  func.func @transform_0(%arg0: i32, %arg1: i32) -> (i32, i32, i32) {
    %c0_i32 = arith.constant 0 : i32
    %c0_i32_0 = arith.constant 0 : i32
    %c0_i32_1 = arith.constant 0 : i32
    return %arg0, %c0_i32, %c0_i32_0 : i32, i32, i32
  }
  func.func @transform_1(%arg0: i32, %arg1: i32) -> (i32, i32, i32) {
    %c0_i32 = arith.constant 0 : i32
    %c0_i32_0 = arith.constant 0 : i32
    %c0_i32_1 = arith.constant 0 : i32
    return %arg0, %c0_i32, %c0_i32_0 : i32, i32, i32
  }
  func.func @transform_2(%arg0: i32, %arg1: i32) -> (i32, i32, i32) {
    %c0_i32 = arith.constant 0 : i32
    %c0_i32_0 = arith.constant 0 : i32
    %c0_i32_1 = arith.constant 0 : i32
    return %arg0, %c0_i32, %c0_i32_0 : i32, i32, i32
  }
  func.func @transform_3(%arg0: i32, %arg1: i32) -> (i32, i32, i32) {
    %c0_i32 = arith.constant 0 : i32
    %c0_i32_0 = arith.constant 0 : i32
    %c0_i32_1 = arith.constant 0 : i32
    return %arg1, %c0_i32, %c0_i32_0 : i32, i32, i32
  }
  func.func @transform_4(%arg0: i32, %arg1: i32) -> (i32, i32, i32) {
    %c0_i32 = arith.constant 0 : i32
    %c0_i32_0 = arith.constant 0 : i32
    %c0_i32_1 = arith.constant 0 : i32
    return %arg1, %c0_i32, %c0_i32_0 : i32, i32, i32
  }
  func.func @transform_5(%arg0: i32, %arg1: i32) -> (i32, i32, i32) {
    %c0_i32 = arith.constant 0 : i32
    %c0_i32_0 = arith.constant 0 : i32
    %c0_i32_1 = arith.constant 0 : i32
    return %arg1, %c0_i32, %c0_i32_0 : i32, i32, i32
  }
  func.func @transform_6(%arg0: i32, %arg1: i32) -> (i32, i32, i32) {
    %c0_i32 = arith.constant 0 : i32
    %c0_i32_0 = arith.constant 0 : i32
    %c0_i32_1 = arith.constant 0 : i32
    return %arg1, %c0_i32, %c0_i32_0 : i32, i32, i32
  }
  func.func @transform_7(%arg0: i32, %arg1: i32) -> (i32, i32, i32) {
    %c0_i32 = arith.constant 0 : i32
    %c0_i32_0 = arith.constant 0 : i32
    %c0_i32_1 = arith.constant 0 : i32
    return %arg1, %c0_i32, %c0_i32_0 : i32, i32, i32
  }
  func.func @transform_8(%arg0: i32, %arg1: i32) -> (i32, i32, i32) {
    %c0_i32 = arith.constant 0 : i32
    %c0_i32_0 = arith.constant 0 : i32
    %c0_i32_1 = arith.constant 0 : i32
    return %arg1, %c0_i32, %c0_i32_0 : i32, i32, i32
  }
  func.func @transform_9(%arg0: i32, %arg1: i32) -> (i32, i32, i32) {
    %c0_i32 = arith.constant 0 : i32
    %c0_i32_0 = arith.constant 0 : i32
    %c0_i32_1 = arith.constant 0 : i32
    return %arg1, %c0_i32, %c0_i32_0 : i32, i32, i32
  }
  func.func @transform_10(%arg0: i32, %arg1: i32) -> (i32, i32, i32) {
    %c0_i32 = arith.constant 0 : i32
    %c0_i32_0 = arith.constant 0 : i32
    %c0_i32_1 = arith.constant 0 : i32
    return %arg1, %c0_i32, %c0_i32_0 : i32, i32, i32
  }
  func.func @transform_11(%arg0: i32, %arg1: i32) -> (i32, i32, i32) {
    %c0_i32 = arith.constant 0 : i32
    %c0_i32_0 = arith.constant 0 : i32
    %c0_i32_1 = arith.constant 0 : i32
    return %arg1, %c0_i32, %c0_i32_0 : i32, i32, i32
  }
  func.func @transform_12(%arg0: i32, %arg1: i32) -> (i32, i32, i32) {
    %c0_i32 = arith.constant 0 : i32
    %c0_i32_0 = arith.constant 0 : i32
    %c0_i32_1 = arith.constant 0 : i32
    return %arg1, %c0_i32, %c0_i32_0 : i32, i32, i32
  }
  func.func @transform_13(%arg0: i32, %arg1: i32) -> (i32, i32, i32) {
    %c0_i32 = arith.constant 0 : i32
    %c0_i32_0 = arith.constant 0 : i32
    %c0_i32_1 = arith.constant 0 : i32
    return %arg1, %c0_i32, %c0_i32_0 : i32, i32, i32
  }
  func.func @transform_14(%arg0: i32, %arg1: i32) -> (i32, i32, i32) {
    %c0_i32 = arith.constant 0 : i32
    %c0_i32_0 = arith.constant 0 : i32
    %c0_i32_1 = arith.constant 0 : i32
    return %arg1, %c0_i32, %c0_i32_0 : i32, i32, i32
  }
  func.func @transform_15(%arg0: i32, %arg1: i32) -> (i32, i32, i32) {
    %c0_i32 = arith.constant 0 : i32
    %c0_i32_0 = arith.constant 0 : i32
    %c0_i32_1 = arith.constant 0 : i32
    return %arg1, %c0_i32, %c0_i32_0 : i32, i32, i32
  }
  func.func @transform_16(%arg0: i32, %arg1: i32) -> (i32, i32, i32) {
    %c0_i32 = arith.constant 0 : i32
    %c0_i32_0 = arith.constant 0 : i32
    %c0_i32_1 = arith.constant 0 : i32
    return %arg1, %c0_i32, %c0_i32_0 : i32, i32, i32
  }
  func.func @transform_17(%arg0: i32, %arg1: i32) -> (i32, i32, i32) {
    %c0_i32 = arith.constant 0 : i32
    %c0_i32_0 = arith.constant 0 : i32
    %c0_i32_1 = arith.constant 0 : i32
    return %arg1, %c0_i32, %c0_i32_0 : i32, i32, i32
  }
  func.func @transform_18(%arg0: i32, %arg1: i32) -> (i32, i32, i32) {
    %c0_i32 = arith.constant 0 : i32
    %c0_i32_0 = arith.constant 0 : i32
    %c0_i32_1 = arith.constant 0 : i32
    return %arg1, %c0_i32, %c0_i32_0 : i32, i32, i32
  }
  func.func @transform_19(%arg0: i32, %arg1: i32) -> (i32, i32) {
    %c0_i32 = arith.constant 0 : i32
    %c0_i32_0 = arith.constant 0 : i32
    %c0_i32_1 = arith.constant 0 : i32
    return %c0_i32, %c0_i32_0 : i32, i32
  }
  func.func @transform_20(%arg0: i32, %arg1: i32) -> (i32, i32) {
    %c0_i32 = arith.constant 0 : i32
    %c0_i32_0 = arith.constant 0 : i32
    %c0_i32_1 = arith.constant 0 : i32
    return %c0_i32, %c0_i32_0 : i32, i32
  }
  func.func @transform_21(%arg0: i32, %arg1: i32) -> (i32, i32) {
    %c0_i32 = arith.constant 0 : i32
    %c0_i32_0 = arith.constant 0 : i32
    %c0_i32_1 = arith.constant 0 : i32
    return %c0_i32, %c0_i32_0 : i32, i32
  }
  func.func @transform_22(%arg0: i32, %arg1: i32) -> (i32, i32) {
    %c0_i32 = arith.constant 0 : i32
    %c0_i32_0 = arith.constant 0 : i32
    %c0_i32_1 = arith.constant 0 : i32
    return %c0_i32, %c0_i32_0 : i32, i32
  }
  func.func @transform_23(%arg0: i32, %arg1: i32) -> (i32, i32, i32) {
    %c0_i32 = arith.constant 0 : i32
    %c0_i32_0 = arith.constant 0 : i32
    %c0_i32_1 = arith.constant 0 : i32
    return %arg0, %c0_i32, %c0_i32_0 : i32, i32, i32
  }
}

</mosaic_0001>

<bundles_post_ra>
// kernel: tpu_custom_call.1
= control target key start
LH: loop header
LB: loop body
LE: loop exit
PB: predicated region body
PF: predicated region fallthrough
CT: control target
= control target key end

     0   :  { %s4614_s0 = inlined_call_operand.hbm [shape: f32[2,8,32], index: 0, kind: input, shape index: {}]   ;;  %s4615_s1 = inlined_call_operand.hbm [shape: f32[4,1,8], index: 1, kind: input, shape index: {}]   ;;  %s4616_s2 = inlined_call_operand.hbm [shape: bf16[2,4,8], index: 2, kind: input, shape index: {}]   ;;  %s4617_s3 = inlined_call_operand.hbm [shape: bf16[2,32,32], index: 3, kind: input, shape index: {}]   ;;  %s4618_s4 = inlined_call_operand.hbm [shape: bf16[2,32,32], index: 4, kind: input, shape index: {}]   ;;  %s4619_s5 = inlined_call_operand.hbm [shape: bf16[2,32,32], index: 5, kind: input, shape index: {}]   ;;  %s4620_s6 = inlined_call_operand.vmem [shape: f32[2,1,32], index: 6, kind: input, shape index: {}]   ;;  %s4621_s7 = inlined_call_operand.hbm [shape: f32[2,1,32], index: 7, kind: input, shape index: {}]   ;;  %s4622_s8 = inlined_call_operand.hbm [shape: f32[2,1,32], index: 8, kind: input, shape index: {}]   ;;  %s4623_s9 = inlined_call_operand.hbm [shape: bf16[2,32,32], index: 9, kind: input, shape index: {}]   ;;  %s4624_s10 = inlined_call_operand.hbm [shape: f32[2,1,32], index: 10, kind: input, shape index: {}]   ;;  %s4625_s11 = inlined_call_operand.hbm [shape: f32[2,1,32], index: 11, kind: input, shape index: {}]   ;;  %s4626_s12 = inlined_call_operand.hbm [shape: f32[2,1,32], index: 12, kind: input, shape index: {}]   ;;  %s4627_s13 = inlined_call_operand.hbm [shape: bf16[2,32,32], index: 13, kind: input, shape index: {}]   ;;  %s4628_s14 = inlined_call_operand.hbm [shape: f32[2,1,32], index: 14, kind: input, shape index: {}]   ;;  %s4629_s15 = inlined_call_operand.hbm [shape: bf16[2,32,32], index: 15, kind: input, shape index: {}]   ;;  %s4630_s16 = inlined_call_operand.hbm [shape: f32[2,1,32], index: 16, kind: input, shape index: {}]   ;;  %s4631_s17 = inlined_call_operand.hbm [shape: f32[2,1,32], index: 17, kind: input, shape index: {}]   ;;  %s4632_s18 = inlined_call_operand.hbm [shape: f32[2,1,32], index: 18, kind: input, shape index: {}]   ;;  %s4633_s19 = inlined_call_operand.vmem [shape: bf16[32,32], index: 19, kind: input, shape index: {}]   ;;  %s4634_s20 = inlined_call_operand.vmem [shape: f32[1,32], index: 20, kind: input, shape index: {}]   ;;  %s4635_s21 = inlined_call_operand.vmem [shape: f32[1,32], index: 21, kind: input, shape index: {}]   ;;  %s4636_s22 = inlined_call_operand.vmem [shape: f32[1,32], index: 22, kind: input, shape index: {}]   ;;  %s4637_s23 = inlined_call_operand.hbm [shape: f32[2,4,32], index: 23, kind: output, shape index: {}]  }
   0x1   :  { %4674 = sst [smem:[#allocation61_spill]] %s4614_s0 }
   0x2   :  { %4675 = sst [smem:[#allocation62_spill]] %s4615_s1 }
   0x3   :  { %4676 = sst [smem:[#allocation63_spill]] %s4616_s2 }
   0x4   :  { %4677 = sst [smem:[#allocation64_spill]] %s4617_s3 }
   0x5   :  { %4678 = sst [smem:[#allocation65_spill]] %s4618_s4 }
   0x6   :  { %4679 = sst [smem:[#allocation66_spill]] %s4619_s5 }
   0x7   :  { %4680 = sst [smem:[#allocation67_spill]] %s4620_s6 }
   0x8   :  { %4681 = sst [smem:[#allocation68_spill]] %s4621_s7 }
   0x9   :  { %4682 = sst [smem:[#allocation69_spill]] %s4622_s8 }
   0xa   :  { %4683 = sst [smem:[#allocation70_spill]] %s4623_s9 }
   0xb   :  { %4684 = sst [smem:[#allocation71_spill]] %s4624_s10 }
   0xc   :  { %4685 = sst [smem:[#allocation72_spill]] %s4631_s17 }
   0xd   :  { %4686 = sst [smem:[#allocation73_spill]] %s4632_s18 }
   0xe   :  { %4687 = sst [smem:[#allocation74_spill]] %s4633_s19 }
   0xf   :  { %4688 = sst [smem:[#allocation75_spill]] %s4634_s20 }
  0x10   :  { %4689 = sst [smem:[#allocation76_spill]] %s4635_s21 }
  0x11   :  { %4690 = sst [smem:[#allocation77_spill]] %s4636_s22 }
  0x12   :  { %4691 = sst [smem:[#allocation78_spill]] %s4637_s23 }
  0x13   :  { %28 = vsyncpa [#allocation4], 0 }
  0x14   :  { %30 = vsyncpa [#allocation4 + $0x1], 0 }
  0x15   :  { %31 = vsyncpa [#allocation7], 0 }
  0x16   :  { %33 = vsyncpa [#allocation7 + $0x1], 0 }
  0x17   :  { %34 = vsyncpa [#allocation10], 0 }
  0x18   :  { %36 = vsyncpa [#allocation10 + $0x1], 0 }
  0x19   :  { %37 = vsyncpa [#allocation13], 0 }
  0x1a   :  { %39 = vsyncpa [#allocation13 + $0x1], 0 }
  0x1b   :  { %40 = vsyncpa [#allocation16], 0 }
  0x1c   :  { %42 = vsyncpa [#allocation16 + $0x1], 0 }
  0x1d   :  { %43 = vsyncpa [#allocation19], 0 }
  0x1e   :  { %45 = vsyncpa [#allocation19 + $0x1], 0 }
  0x1f   :  { %46 = vsyncpa [#allocation22], 0 }
  0x20   :  { %48 = vsyncpa [#allocation22 + $0x1], 0 }
  0x21   :  { %49 = vsyncpa [#allocation25], 0 }
  0x22   :  { %51 = vsyncpa [#allocation25 + $0x1], 0 }
  0x23   :  { %52 = vsyncpa [#allocation28], 0 }
  0x24   :  { %54 = vsyncpa [#allocation28 + $0x1], 0 }
  0x25   :  { %55 = vsyncpa [#allocation31], 0 }
  0x26   :  { %57 = vsyncpa [#allocation31 + $0x1], 0 }
  0x27   :  { %58 = vsyncpa [#allocation5], 0 }
  0x28   :  { %60 = vsyncpa [#allocation5 + $0x1], 0  ;;  %s3878_s4 = smov 0   ;;  %s3880_s30 = smov 0  }
  0x29   :  { %s3882_s24 = smov 0   ;;  %s3884_s25 = smov 0  }
  0x2a   :  { %s3886_s5 = smov 0   ;;  %s3888_s1 = smov 0  }
  0x2b   :  { %s3890_s26 = smov 0   ;;  %s3892_s2 = smov 0  }
  0x2c   :  { %s3894_s6 = smov 0   ;;  %s3896_s27 = smov 0  }
  0x2d   :  { %s3898_s7 = smov 0  }
  0x2e LB: > { %4692 = sst [smem:[#allocation44_spill]] %s3710_s30  ;;  %s3934_s28 = sadd.s32 4294967295, %s3746_s7   ;;  %s3746_s7 = sphi %s3898_s7, %s66_s7   ;;  %s3742_s27 = sphi %s3896_s27, %s4781_s27   ;;  %s3738_s6 = sphi %s3894_s6, %s4780_s6   ;;  %s3734_s2 = sphi %s3892_s2, %s4779_s2   ;;  %s3730_s26 = sphi %s3890_s26, %s4778_s26   ;;  %s3726_s1 = sphi %s3888_s1, %s4775_s1   ;;  %s3722_s5 = sphi %s3886_s5, %s4774_s5   ;;  %s3718_s25 = sphi %s3884_s25, %s4773_s25   ;;  %s3714_s24 = sphi %s3882_s24, %s4772_s24   ;;  %s3710_s30 = sphi %s3880_s30, %s4771_s30   ;;  %s3706_s4 = sphi %s3878_s4, %s4770_s4  }
  0x2f   : > { %4693 = sst [smem:[#allocation45_spill]] %s3714_s24  ;;  %s2775_s29 = sadd.s32 4294967294, %s3746_s7  }
  0x30   : > { %4694 = sst [smem:[#allocation46_spill]] %s3718_s25  ;;  %s75_s3 = sadd.s32 1, %s3738_s6 }
  0x31   : > { %4695 = sst [smem:[#allocation47_spill]] %s3722_s5  ;;  %s78_s0 = sadd.s32 1, %s3742_s27 }
  0x32   : > { %4696 = sst [smem:[#allocation48_spill]] %s3726_s1  ;;  %p76_p0 = scmp.ge.s32.totalorder %s75_s3, 2 }
  0x33   : > { %4697 = sst [smem:[#allocation49_spill]] %s3730_s26  ;;  %s85_s23 = sadd.s32 1, %s3726_s1 }
  0x34   : > { %4698 = sst [smem:[#allocation50_spill]] %s3734_s2  ;;  %p92_p1 = scmp.ne.s32.totalorder %s3726_s1, %s3722_s5 }
  0x35   : > { %4699 = sst [smem:[#allocation51_spill]] %s3746_s7  ;;  %p93_p2 = scmp.eq.s32.totalorder %s3746_s7, 0 }
  0x36   : > { %4700 = sst [smem:[#allocation52_spill]] %s3934_s28  ;;  %s4783_s3 = smov (%p76_p0, %s75_s3), 0 }
  0x37   : > { %4701 = sst [smem:[#allocation53_spill]] %s4783_s3  ;;  %s4785_s0 = smov (!%p76_p0, %s78_s0), %s3742_s27 }
  0x38   : > { %p3951_p3 = por %p93_p2, %p92_p1  ;;  %p4642_p4 = scmp.ne.s32.totalorder %s3722_s5, %s3718_s25 }
  0x39   : > { %p80_p5 = scmp.ge.s32.totalorder %s4785_s0, 2  ;;  %p99_p6 = scmp.eq.s32.totalorder %s3934_s28, 0 }
  0x3a   : > { %s160_s22 = ssub.s32 %s3738_s6, %s4783_s3  ;;  %s163_s21 = sadd.s32 1, %s3714_s24 }
  0x3b   : > { %s4787_s0 = smov (%p80_p5, %s4785_s0), 0  ;;  %p3968_p7 = por %p99_p6, %p4642_p4 }
  0x3c   : > { %4703 = sst [smem:[#allocation54_spill]] %s4787_s0  ;;  %p161_p8 = scmp.eq.s32.totalorder %s160_s22, 0 }
  0x3d   : > { %s4704_s20 = scalar_select %p3968_p7, 1, 0 }
  0x3e   : > { %s82_s19 = ssub.s32 %s3742_s27, %s4787_s0  ;;  %p170_p9 = scmp.ne.s32.totalorder %s3714_s24, %s3710_s30 }
  0x3f   : > { %4705 = sst [smem:[#allocation55_spill]] %s4704_s20  ;;  %p83_p10 = scmp.eq.s32.totalorder %s82_s19, 0 }
  0x40   : > { %p176_p11 = scmp.ne.s32.totalorder %s3710_s30, %s3706_s4  ;;  %p3986_p12 = por %p170_p9, %p93_p2 }
  0x41   : > { %s3979_s26 = scalar_select %p161_p8, %s3714_s24, %s163_s21  }
  0x42   : > { %s3982_s3 = scalar_select %p83_p10, %s3726_s1, %s85_s23  }
  0x43   : > { %4706 = sst [smem:[#allocation56_spill]] %s3979_s26  ;;  %p3992_p13 = por %p176_p11, %p99_p6 }
  0x44   : > { %4707 = sst [smem:[#allocation57_spill]] %s3982_s3  ;;  %p674_p0 = scmp.eq.s32.totalorder %s3934_s28, 3 }
  0x45   : > { %s4709_s17 = scalar_select %p3992_p13, 1, 0 }
  0x46   : > { %p680_p5 = scmp.eq.s32.totalorder %s2775_s29, 3  ;;  %p4000_p4 = por %p674_p0, %p92_p1 }
  0x47   : > { %4710 = sst [smem:[#allocation58_spill]] %s4709_s17  ;;  %p4713_p8 = scmp.ne.s32.totalorder %s3722_s5, %s3718_s25 }
  0x48   : > { %s4711_s19 = scalar_select %p4000_p4, 1, 0 }
  0x49   : > { %p4007_p10 = por %p680_p5, %p4713_p8  ;;  %p2777_p2 = scmp.ge.s32.totalorder %s3746_s7, 4 }
  0x4a   : > { %4712 = sst [smem:[#allocation59_spill]] %s4711_s19  ;;  %s4013_s22 = sand.u32 (!%p2777_p2), 1, %s3726_s1  }
  0x4b   : > { %s4714_s21 = scalar_select %p4007_p10, 1, 0 }
  0x4c   : > { %708 = sbr.rel (%p2777_p2) target bundleno = 158 (0x9e), region = 32  ;;  %s4016_s23 = sand.u32 (!%p2777_p2), 1, %s3746_s7  }
  0x4d   : > { %4715 = sst [smem:[#allocation60_spill]] %s4714_s21  ;;  %s4655_s4 = sshll.u32 (!%p2777_p2), %s4013_s22, 1 }
  0x4e   : > { %s4656_s29 = sshll.u32 (!%p2777_p2), %s3742_s27, 1  ;;  %s4716_s26 = sld [smem:[#allocation62_spill]] (!%p2777_p2) }
  0x4f   : > { %s735_s25 = scalar_lea.vmem (!%p2777_p2), [#allocation6], %s4655_s4  ;;  %s4657_s1 = scalar_lea.sflag (!%p2777_p2), [#allocation7], %s4016_s23 }
  0x50   : > { %s742_s19 = sshll.u32 (!%p2777_p2), %s735_s25, 4  ;;  %s3748_s30 = smov (!%p2777_p2), 16   ;;  %s743_s19 = int_to_ptr.vmem [resolvable:$true] %s742_s19 }
  0x51   : > { %s3749_s28 = smov 1   ;;  %s4033_s20 = sand.u32 1, %s3714_s24  }
  0x52   : > { %s4036_s3 = sshll.u32 %s3738_s6, 4  ;;  %s4039_s25 = sshll.u32 %s4033_s20, 4 }
  0x53   : > { %s4718_s0 = sld [smem:[#allocation66_spill]]  ;;  %s4664_s7 = scalar_lea.sflag [#allocation13], %s4016_s23 }
  0x54   : > { %s739_s21 = scalar_lea.hbm %s4716_s26, %s4656_s29  ;;  %s4719_s8 = sld [smem:[#allocation69_spill]] }
  0x55   : > { %s740_s17 = sshll.u32 %s739_s21, 4  ;;  %s4717_s21 = sld [smem:[#allocation64_spill]]  ;;  %s741_s17 = int_to_ptr.hbm [resolvable:$true] %s740_s17 }
  0x56   : > { %2909 = dma.hbm_to_vmem [thread:$0]  (%p3951_p3), %s741_s17, 32, %s743_s19, %s4657_s1, %s3748_s30, %s3748_s30, %s3749_s28  }
  0x57   : > { %s775_s17 = scalar_lea.vmem [#allocation9], %s4039_s25  ;;  %s4663_s28 = scalar_lea.sflag [#allocation10], %s4016_s23 }
  0x58   : > { %s783_s30 = sshll.u32 %s775_s17, 4  ;;  %s4667_s19 = smov 64   ;;  %s784_s30 = int_to_ptr.vmem [resolvable:$true] %s783_s30 }
  0x59   : > { %s4671_s1 = smov 4   ;;  %s819_s17 = scalar_lea.vmem [#allocation12], %s4039_s25 }
  0x5a   : > { %s827_s5 = sshll.u32 %s819_s17, 4  ;;  %s866_s26 = scalar_lea.hbm %s4719_s8, %s3738_s6  ;;  %s828_s5 = int_to_ptr.vmem [resolvable:$true] %s827_s5 }
  0x5b   : > { %s780_s4 = scalar_lea.hbm %s4717_s21, %s4036_s3  ;;  %s824_s21 = scalar_lea.hbm %s4718_s0, %s4036_s3 }
  0x5c   : > { %s781_s29 = sshll.u32 %s780_s4, 4  ;;  %s825_s24 = sshll.u32 %s824_s21, 4  ;;  %s782_s29 = int_to_ptr.hbm [resolvable:$true] %s781_s29  ;;  %s826_s24 = int_to_ptr.hbm [resolvable:$true] %s825_s24 }
  0x5d   : > { %2911 = dma.hbm_to_vmem [thread:$0]  (%p3986_p12), %s782_s29, 256, %s784_s30, %s4663_s28, %s4667_s19, %s4667_s19, %s4671_s1  }
  0x5e   : > { %2913 = dma.hbm_to_vmem [thread:$0]  (%p3986_p12), %s826_s24, 256, %s828_s5, %s4664_s7, %s4667_s19, %s4667_s19, %s4671_s1  }
  0x5f   : > { %s863_s4 = scalar_lea.vmem [#allocation15], %s4033_s20  ;;  %s868_s21 = sshll.u32 %s866_s26, 4  ;;  %s869_s21 = int_to_ptr.hbm [resolvable:$true] %s868_s21 }
  0x60   : > { %s870_s0 = sshll.u32 %s863_s4, 4  ;;  %s4665_s17 = scalar_lea.sflag [#allocation16], %s4016_s23  ;;  %s871_s0 = int_to_ptr.vmem [resolvable:$true] %s870_s0 }
  0x61   : > { %2915 = dma.hbm_to_vmem [thread:$0]  (%p3986_p12), %s869_s21, 16, %s871_s0, %s4665_s17  }
  0x62   : > { %s4720_s10 = sld [smem:[#allocation71_spill]]  ;;  %s902_s30 = scalar_lea.vmem [#allocation18], %s4033_s20 }
  0x63   : > { %s909_s7 = sshll.u32 %s902_s30, 4  ;;  %s4666_s26 = scalar_lea.sflag [#allocation19], %s4016_s23  ;;  %s910_s7 = int_to_ptr.vmem [resolvable:$true] %s909_s7 }
  0x64   : > { %s939_s28 = scalar_lea.hbm %s4626_s12, %s3738_s6  ;;  %s936_s21 = scalar_lea.vmem [#allocation21], %s4033_s20 }
  0x65   : > { %s943_s24 = sshll.u32 %s936_s21, 4  ;;  %s4670_s30 = scalar_lea.sflag [#allocation22], %s4016_s23  ;;  %s944_s24 = int_to_ptr.vmem [resolvable:$true] %s943_s24 }
  0x66   : > { %s975_s0 = scalar_lea.vmem [#allocation24], %s4033_s20  ;;  %s1014_s17 = scalar_lea.vmem [#allocation27], %s4033_s20 }
  0x67   : > { %s4721_s21 = sld [smem:[#allocation61_spill]]  ;;  %s713_s1 = scalar_lea.sflag [#allocation4], %s4013_s22 }
  0x68   : > { %s905_s5 = scalar_lea.hbm %s4720_s10, %s3738_s6  ;;  %s4723_s8 = sld [smem:[#allocation63_spill]] }
  0x69   : > { %s907_s29 = sshll.u32 %s905_s5, 4  ;;  %s941_s5 = sshll.u32 %s939_s28, 4  ;;  %s908_s29 = int_to_ptr.hbm [resolvable:$true] %s907_s29  ;;  %s942_s5 = int_to_ptr.hbm [resolvable:$true] %s941_s5 }
  0x6a   : > { %2917 = dma.hbm_to_vmem [thread:$0]  (%p3986_p12), %s908_s29, 16, %s910_s7, %s4666_s26  }
  0x6b   : > { %2919 = dma.hbm_to_vmem [thread:$0]  (%p3986_p12), %s942_s5, 16, %s944_s24, %s4670_s30  }
  0x6c   : > { %s978_s29 = scalar_lea.hbm %s4628_s14, %s3738_s6  ;;  %s982_s26 = sshll.u32 %s975_s0, 4  ;;  %s983_s26 = int_to_ptr.vmem [resolvable:$true] %s982_s26 }
  0x6d   : > { %s980_s4 = sshll.u32 %s978_s29, 4  ;;  %s4669_s28 = scalar_lea.sflag [#allocation25], %s4016_s23  ;;  %s981_s4 = int_to_ptr.hbm [resolvable:$true] %s980_s4 }
  0x6e   : > { %2921 = dma.hbm_to_vmem [thread:$0]  (%p3986_p12), %s981_s4, 16, %s983_s26, %s4669_s28  }
  0x6f   : > { %s1017_s24 = scalar_lea.hbm %s4630_s16, %s3738_s6  ;;  %s1021_s5 = sshll.u32 %s1014_s17, 4  ;;  %s1022_s5 = int_to_ptr.vmem [resolvable:$true] %s1021_s5 }
  0x70   : > { %s1019_s7 = sshll.u32 %s1017_s24, 4  ;;  %s4673_s29 = scalar_lea.sflag [#allocation28], %s4016_s23  ;;  %s1020_s7 = int_to_ptr.hbm [resolvable:$true] %s1019_s7 }
  0x71   : > { %2923 = dma.hbm_to_vmem [thread:$0]  (%p3986_p12), %s1020_s7, 16, %s1022_s5, %s4673_s29  }
  0x72   : > { %s2778_s0 = sshll.u32 %s4013_s22, 3  ;;  %s2779_s26 = sshll.u32 %s3742_s27, 3 }
  0x73   : > { %s720_s28 = scalar_lea.hbm %s4721_s21, %s2779_s26  ;;  %s716_s17 = scalar_lea.vmem [#allocation3], %s2778_s0 }
  0x74   : > { %s722_s30 = sshll.u32 %s720_s28, 4  ;;  %s724_s24 = sshll.u32 %s716_s17, 4  ;;  %s723_s30 = int_to_ptr.hbm [resolvable:$true] %s722_s30  ;;  %s725_s24 = int_to_ptr.vmem [resolvable:$true] %s724_s24 }
  0x75   : > { %2908 = dma.hbm_to_vmem [thread:$0]  (%p3951_p3), %s723_s30, 128, %s725_s24, %s713_s1  }
  0x76   : > { %s4722_s5 = sshll.u32 %s3742_s27, 1  ;;  %s4724_s26 = sshll.u32 %s4013_s22, 1 }
  0x77   : > { %s760_s10 = scalar_lea.hbm %s4723_s8, %s4722_s5  ;;  %s756_s28 = scalar_lea.vmem [#allocation8], %s4724_s26 }
  0x78   : > { %s762_s4 = sshll.u32 %s760_s10, 4  ;;  %s764_s19 = sshll.u32 %s756_s28, 4  ;;  %s763_s4 = int_to_ptr.hbm [resolvable:$true] %s762_s4  ;;  %s765_s19 = int_to_ptr.vmem [resolvable:$true] %s764_s19 }
  0x79   : > { %s4725_s0 = scalar_lea.sflag [#allocation7], %s4016_s23  ;;  %s4726_s30 = sld [smem:[#allocation65_spill]] }
  0x7a   : > { %2910 = dma.hbm_to_vmem [thread:$0]  (%p3951_p3), %s763_s4, 32, %s765_s19, %s4725_s0  }
  0x7b   : > { %s797_s8 = scalar_lea.vmem [#allocation11], %s4039_s25  ;;  %s4727_s10 = smov 4  }
  0x7c   : > { %s805_s24 = sshll.u32 %s797_s8, 4  ;;  %s4728_s22 = smov 64   ;;  %s806_s24 = int_to_ptr.vmem [resolvable:$true] %s805_s24 }
  0x7d   : > { %s4729_s2 = scalar_lea.sflag [#allocation10], %s4016_s23  ;;  %s4730_s4 = sld [smem:[#allocation68_spill]] }
  0x7e   : > { %s846_s19 = scalar_lea.vmem [#allocation14], %s4033_s20  ;;  %s4731_s21 = scalar_lea.sflag [#allocation13], %s4016_s23 }
  0x7f   : > { %s802_s17 = scalar_lea.hbm %s4726_s30, %s4036_s3  ;;  %s853_s0 = sshll.u32 %s846_s19, 4  ;;  %s854_s0 = int_to_ptr.vmem [resolvable:$true] %s853_s0 }
  0x80   : > { %s803_s29 = sshll.u32 %s802_s17, 4  ;;  %s4732_s9 = sld [smem:[#allocation70_spill]]  ;;  %s804_s29 = int_to_ptr.hbm [resolvable:$true] %s803_s29 }
  0x81   : > { %2912 = dma.hbm_to_vmem [thread:$0]  (%p3986_p12), %s804_s29, 256, %s806_s24, %s4729_s2, %s4728_s22, %s4728_s22, %s4727_s10  }
  0x82   : > { %s881_s8 = scalar_lea.vmem [#allocation17], %s4039_s25  ;;  %s4733_s2 = scalar_lea.sflag [#allocation16], %s4016_s23 }
  0x83   : > { %s849_s26 = scalar_lea.hbm %s4730_s4, %s3738_s6  ;;  %s889_s24 = sshll.u32 %s881_s8, 4  ;;  %s890_s24 = int_to_ptr.vmem [resolvable:$true] %s889_s24 }
  0x84   : > { %s851_s28 = sshll.u32 %s849_s26, 4  ;;  %s922_s4 = scalar_lea.hbm %s4625_s11, %s3738_s6  ;;  %s852_s28 = int_to_ptr.hbm [resolvable:$true] %s851_s28 }
  0x85   : > { %2914 = dma.hbm_to_vmem [thread:$0]  (%p3986_p12), %s852_s28, 16, %s854_s0, %s4731_s21  }
  0x86   : > { %s886_s17 = scalar_lea.hbm %s4732_s9, %s4036_s3  ;;  %s924_s26 = sshll.u32 %s922_s4, 4  ;;  %s925_s26 = int_to_ptr.hbm [resolvable:$true] %s924_s26 }
  0x87   : > { %s887_s29 = sshll.u32 %s886_s17, 4  ;;  %s919_s28 = scalar_lea.vmem [#allocation20], %s4033_s20  ;;  %s888_s29 = int_to_ptr.hbm [resolvable:$true] %s887_s29 }
  0x88   : > { %2916 = dma.hbm_to_vmem [thread:$0]  (%p3986_p12), %s888_s29, 256, %s890_s24, %s4733_s2, %s4728_s22, %s4728_s22, %s4727_s10  }
  0x89   : > { %s926_s19 = sshll.u32 %s919_s28, 4  ;;  %s4734_s0 = scalar_lea.sflag [#allocation19], %s4016_s23  ;;  %s927_s19 = int_to_ptr.vmem [resolvable:$true] %s926_s19 }
  0x8a   : > { %2918 = dma.hbm_to_vmem [thread:$0]  (%p3986_p12), %s925_s26, 16, %s927_s19, %s4734_s0  }
  0x8b   : > { %s959_s30 = scalar_lea.hbm %s4627_s13, %s4036_s3  ;;  %s954_s29 = scalar_lea.vmem [#allocation23], %s4039_s25 }
  0x8c   : > { %s960_s17 = sshll.u32 %s959_s30, 4  ;;  %s962_s8 = sshll.u32 %s954_s29, 4  ;;  %s961_s17 = int_to_ptr.hbm [resolvable:$true] %s960_s17  ;;  %s963_s8 = int_to_ptr.vmem [resolvable:$true] %s962_s8 }
  0x8d   : > { %s4735_s24 = scalar_lea.sflag [#allocation22], %s4016_s23  ;;  %s998_s7 = scalar_lea.hbm %s4629_s15, %s4036_s3 }
  0x8e   : > { %2920 = dma.hbm_to_vmem [thread:$0]  (%p3986_p12), %s961_s17, 256, %s963_s8, %s4735_s24, %s4728_s22, %s4728_s22, %s4727_s10  }
  0x8f   : > { %s999_s4 = sshll.u32 %s998_s7, 4  ;;  %s993_s26 = scalar_lea.vmem [#allocation26], %s4039_s25  ;;  %s1000_s4 = int_to_ptr.hbm [resolvable:$true] %s999_s4 }
  0x90   : > { %s1001_s28 = sshll.u32 %s993_s26, 4  ;;  %s4736_s19 = scalar_lea.sflag [#allocation25], %s4016_s23  ;;  %s1002_s28 = int_to_ptr.vmem [resolvable:$true] %s1001_s28 }
  0x91   : > { %2922 = dma.hbm_to_vmem [thread:$0]  (%p3986_p12), %s1000_s4, 256, %s1002_s28, %s4736_s19, %s4728_s22, %s4728_s22, %s4727_s10  }
  0x92   : > { %s4737_s1 = sld [smem:[#allocation72_spill]]  ;;  %s1031_s29 = scalar_lea.vmem [#allocation29], %s4033_s20 }
  0x93   : > { %s1038_s3 = sshll.u32 %s1031_s29, 4  ;;  %s4738_s25 = scalar_lea.sflag [#allocation28], %s4016_s23  ;;  %s1039_s3 = int_to_ptr.vmem [resolvable:$true] %s1038_s3 }
  0x94   : > { %s4739_s2 = sld [smem:[#allocation73_spill]]  ;;  %s1048_s7 = scalar_lea.vmem [#allocation30], %s4033_s20 }
  0x95   : > { %s1055_s26 = sshll.u32 %s1048_s7, 4  ;;  %s1046_s10 = scalar_lea.sflag [#allocation31], %s4033_s20  ;;  %s1056_s26 = int_to_ptr.vmem [resolvable:$true] %s1055_s26 }
  0x98   : > { %s1034_s30 = scalar_lea.hbm %s4737_s1, %s3738_s6 }
  0x99   : > { %s1036_s17 = sshll.u32 %s1034_s30, 4  ;;  %s1037_s17 = int_to_ptr.hbm [resolvable:$true] %s1036_s17 }
  0x9a   : > { %2924 = dma.hbm_to_vmem [thread:$0]  (%p3986_p12), %s1037_s17, 16, %s1039_s3, %s4738_s25  }
  0x9b   : > { %s1051_s5 = scalar_lea.hbm %s4739_s2, %s3738_s6 }
  0x9c   : > { %s1053_s9 = sshll.u32 %s1051_s5, 4  ;;  %s1054_s9 = int_to_ptr.hbm [resolvable:$true] %s1053_s9 }
  0x9d   : > { %2925 = dma.hbm_to_vmem [thread:$0]  (%p3986_p12), %s1054_s9, 16, %s1056_s26, %s1046_s10  }
  0x9e PF: > { %s4740_s22 = sld [smem:[#allocation51_spill]] }
  0xa4   : > { %p2802_p1 = scmp.ge.s32.totalorder %s4740_s22, 1  ;;  %p1060_p3 = scmp.lt.s32.totalorder %s4740_s22, 5 }
  0xa6   : > { %p1061_p6 = pnand %p2802_p1, %p1060_p3 }
  0xa7   : > { %s4741_s23 = sld [smem:[#allocation47_spill]] (!%p1061_p6) }
  0xa8   : > { %1064 = sbr.rel (%p1061_p6) target bundleno = 2374 (0x946), region = 112 }
  0xad   : > { %s4222_s28 = sand.u32 1, %s4741_s23  }
  0xae   : > { %s2803_s19 = sshll.u32 %s4222_s28, 3  ;;  %s1067_s0 = scalar_lea.sflag [#allocation4], %s4222_s28 }
  0xaf   : > { %s4226_s21 = scalar_lea.vmem [#allocation3], %s2803_s19 }
  0xb0   : > { %3661 = dma.done.wait (%p3968_p7), %s1067_s0, 128  }
  0xb1   : > { %3663 = vsyncadd (%p3968_p7), %s1067_s0, 4294967168  ;;  %s4743_s9 = sld [smem:[#allocation52_spill]]  ;;  %s2804_s20 = sshll.u32 %s4222_s28, 1 }
  0xb2   : > { %s4237_s30 = scalar_lea.vmem [#allocation6], %s2804_s20 }
  0xb7   : > { %s4233_s18 = sand.u32 1, %s4743_s9  }
  0xb8   : > { %s1077_s1 = scalar_lea.sflag [#allocation7], %s4233_s18 }
  0xb9   : > { %3665 = dma.done.wait (%p3968_p7), %s1077_s1, 64  }
  0xba   : > { %3667 = vsyncadd (%p3968_p7), %s1077_s1, 4294967232  ;;  %s4744_s17 = sld [smem:[#allocation44_spill]]  ;;  %s4249_s8 = scalar_lea.vmem [#allocation8], %s2804_s20 }
  0xbb   : > { %s1097_s24 = scalar_lea.sflag [#allocation10], %s4233_s18 }
  0xc0   : > { %s4244_s3 = sand.u32 1, %s4744_s17  }
  0xc1   : > { %s4247_s25 = sshll.u32 %s4244_s3, 4 }
  0xc2   : > { %s1100_s2 = scalar_lea.vmem [#allocation9], %s4247_s25 }
  0xc3   : > { %3669 = dma.done.wait (%p3992_p13), %s1097_s24, 512  }
  0xc4   : > { %3671 = vsyncadd (%p3992_p13), %s1097_s24, 4294966784  ;;  %s1110_s5 = scalar_lea.vmem [#allocation11], %s4247_s25  ;;  %s1117_s7 = scalar_lea.sflag [#allocation13], %s4233_s18 }
  0xc5   : > { %s1120_s26 = scalar_lea.vmem [#allocation12], %s4247_s25 }
  0xc6   : > { %3673 = dma.done.wait (%p3992_p13), %s1117_s7, 272  }
  0xc7   : > { %3675 = vsyncadd (%p3992_p13), %s1117_s7, 4294967024  ;;  %s1129_s10 = scalar_lea.vmem [#allocation14], %s4244_s3  ;;  %s1136_s22 = scalar_lea.sflag [#allocation16], %s4233_s18 }
  0xc8   : > { %s1138_s23 = scalar_lea.vmem [#allocation15], %s4244_s3 }
  0xc9   : > { %3677 = dma.done.wait (%p3992_p13), %s1136_s22, 272  }
  0xca   : > { %3679 = vsyncadd (%p3992_p13), %s1136_s22, 4294967024  ;;  %s1155_s19 = scalar_lea.sflag [#allocation19], %s4233_s18 }
  0xcb   : > { %3681 = dma.done.wait (%p3992_p13), %s1155_s19, 32  }
  0xcc   : > { %3683 = vsyncadd (%p3992_p13), %s1155_s19, 4294967264  ;;  %s1173_s20 = scalar_lea.sflag [#allocation22], %s4233_s18 }
  0xcd   : > { %3685 = dma.done.wait (%p3992_p13), %s1173_s20, 272  }
  0xce   : > { %3687 = vsyncadd (%p3992_p13), %s1173_s20, 4294967024  ;;  %s1192_s24 = scalar_lea.sflag [#allocation25], %s4233_s18 }
  0xcf   : > { %3689 = dma.done.wait (%p3992_p13), %s1192_s24, 272  }
  0xd0   : > { %3691 = vsyncadd (%p3992_p13), %s1192_s24, 4294967024  ;;  %s1211_s19 = scalar_lea.sflag [#allocation28], %s4233_s18 }
  0xd1   : > { %3693 = dma.done.wait (%p3992_p13), %s1211_s19, 32  }
  0xd2   : > { %3695 = vsyncadd (%p3992_p13), %s1211_s19, 4294967264  ;;  %s1222_s20 = scalar_lea.vmem [#allocation29], %s4244_s3  ;;  %s1229_s7 = scalar_lea.sflag [#allocation31], %s4244_s3 }
  0xd3   : > { %s1231_s9 = scalar_lea.vmem [#allocation30], %s4244_s3 }
  0xd4   : > { %3697 = dma.done.wait (%p3992_p13), %s1229_s7, 16  }
  0xd5   : > { %3699 = vsyncadd (%p3992_p13), %s1229_s7, 4294967280  ;;  %s4746_s18 = sld [smem:[#allocation49_spill]]  ;;  %s2812_s24 = sshll.u32 %s4222_s28, 2 }
  0xd6   : > { %s4747_s17 = sld [smem:[#allocation67_spill]]  ;;  %s4312_s4 = scalar_lea.vmem [#allocation32], %s2812_s24 }
  0xdb   : > { %p1375_p7 = scmp.lt.s32.totalorder %s4746_s18, 1  ;;  %p2813_p9 = scmp.ne.s32.totalorder %s4746_s18, 0 }
  0xdd   : > { %s1376_s1 = scalar_select %p1375_p7, %s4746_s18, 1 }
  0xde   : > { %1382 = sbr.rel (%p2813_p9) target bundleno = 229 (0xe5), region = 188 }
  0xdf   : > { %s1377_s0 = scalar_lea.vmem %s4747_s17, %s1376_s1 }
  0xe3   : > { %v1383_v0 = vld [vmem:[%s4226_s21] sm:$0xff]  ;;  %vm1384_vm0 = vcmask 261120  }
  0xe4   : > { %1385 = vst.msk [vmem:[#allocation2] sm:$0xff] %vm1384_vm0, %v1383_v0 }
  0xe5 PF: > { %v2897_v1 = vld [vmem:[%s1110_s5 + $0x8] sm:$0xff]  ;;  %v2896_v2 = vld [vmem:[%s1110_s5] sm:$0xff]  ;;  %vm1408_vm1 = vcmask 261120   ;;  %s3752_s21 = smov 112   ;;  %v3753_v17 = vmov 1983009808  }
  0xe6   : > { %v2895_v4 = vld [vmem:[%s1100_s2 + $0x8] sm:$0xff]  ;;  %1451 = vmatpush.bf16.msra.mxu1 %v2897_v1  ;;  %v2894_v5 = vld [vmem:[%s1100_s2] sm:$0xff]  ;;  %v1499_v18 = vunpack.c.l.s4 %v3753_v17  ;;  %vm1496_vm2 = vcmask 1047556   ;;  %v3754_v21 = vmov 1934713408   ;;  %vm1780_vm3 = vcmask 130048  }
  0xe7   : > { %1418 = vmatpush.bf16.msra.mxu0 %v2895_v4  ;;  %v3049_v7 = vld [vmem:[%s1129_s10] ss:$0 sm:$0xff]  ;;  %v2899_v15 = vld [vmem:[%s1120_s26 + $0x8] sm:$0xff]  ;;  %v1521_v22 = vunpack.c.l.s4 %v3754_v21  ;;  %vm1831_vm4 = vcmask 64512   ;;  %vm1859_vm5 = vcmask 1043456   ;;  %s3755_s29 = smov 16  }
  0xe8   : > { %v3050_v11 = vld [vmem:[%s1377_s0] ss:$0 sm:$0xff]  ;;  %1484 = vmatpush.bf16.msra.mxu2 %v2899_v15  ;;  %v4339_v19 = vunpack.c.0.s8 %v1499_v18  ;;  %s4750_s5 = scalar_lea.vmem [#allocation18], %s4244_s3  ;;  %s4754_s0 = scalar_lea.vmem [#allocation21], %s4244_s3 }
  0xe9   : > { %v2898_v16 = vld [vmem:[%s1120_s26] sm:$0xff]  ;;  %v4344_v27 = vunpack.c.0.s8 %v1521_v22  ;;  %s4751_s26 = scalar_lea.vmem [#allocation23], %s4247_s25  ;;  %s4755_s1 = scalar_lea.vmem [#allocation26], %s4247_s25 }
  0xea   : > { %1452 = vmatpush.bf16.msra.mxu1 %v2896_v2  ;;  %s4752_s10 = smov %s4751_s26  ;;  %s4756_s17 = smov %s4755_s1 }
  0xeb   : > { %v4320_v3 = vld [vmem:[#allocation2] sm:$0xff]  ;;  %1419 = vmatpush.bf16.msra.mxu0 %v2894_v5  ;;  %s4757_s7 = scalar_lea.vmem [#allocation24], %s4244_s3  ;;  %s4758_s22 = scalar_lea.vmem [#allocation27], %s4244_s3 }
  0xec   : > { %v1387_v6 = vpack.c.bf16 %v4320_v3, %v4320_v3  ;;  %1485 = vmatpush.bf16.msra.mxu2 %v2898_v16 }
  0xee   : > { %2831 = vmatmul.msk.bf16.vlgmr.msra.gmra.mxu1 %vm1408_vm1, %v1387_v6  ;;  %2822 = vmatmul.msk.bf16.vlgmr.msra.gmra.mxu0 %vm1408_vm1, %v1387_v6 }
  0xef   : > { %2840 = vmatmul.msk.bf16.vlgmr.msra.gmra.mxu2 %vm1408_vm1, %v1387_v6 }
 0x16b   : > { %v1454_v8 = vpop.f32.mrf.mxu1  ;;  %v1421_v10 = vpop.f32.mrf.mxu0 }
 0x16c   : > { %v1455_v9 = vadd.f32 %v3049_v7, %v1454_v8  ;;  %v1422_v12 = vadd.f32 %v3050_v11, %v1421_v10 }
 0x16e   : > { %1589 = vrot.lane.b32.xlu0 %v1455_v9, %s3752_s21  ;;  %v1592_v20 = vrot.slane %v1455_v9, 4  ;;  %v1597_v24 = vperm.slane %v1455_v9, %v4339_v19  ;;  %v1495_v25 = vrot.slane %v1422_v12, 4  ;;  %v1501_v39 = vperm.slane %v1422_v12, %v4339_v19 }
 0x170   : > { %v1593_v23 = vsel %vm1496_vm2, 0.0, %v1592_v20  ;;  %v1614_v29 = vrot.slane %v1597_v24, 4  ;;  %v1497_v32 = vsel %vm1496_vm2, 0.0, %v1495_v25  ;;  %v1518_v51 = vrot.slane %v1501_v39, 4 }
 0x171   : > { %v1601_v26 = vperm.slane %v1593_v23, %v4339_v19  ;;  %v1505_v40 = vperm.slane %v1497_v32, %v4339_v19 }
 0x173   : > { %v1456_v13 = vpop.f32.mrf.mxu1  ;;  %v1423_v14 = vpop.f32.mrf.mxu0  ;;  %v1626_v36 = vrot.slane %v1601_v26, 4  ;;  %v1530_v55 = vrot.slane %v1505_v40, 4 }
 0x176   : > { %1492 = vrot.lane.b32.xlu0 %v1422_v12, %s3752_s21 }
 0x1e0   : > { %v1590_v28 = vpop.permute.xlu0 %1589 }
 0x1e1   : > { %v1602_v30 = vrot.slane %v1590_v28, 4  ;;  %v1607_v31 = vperm.slane %v1590_v28, %v4339_v19 }
 0x1e3   : > { %v1603_v33 = vsel %vm1496_vm2, 0.0, %v1602_v30  ;;  %v1612_v34 = vrot.slane %v1607_v31, 4  ;;  %v1615_v35 = vsel %vm1496_vm2, %v1607_v31, %v1614_v29 }
 0x1e4   : > { %v1611_v37 = vperm.slane %v1603_v33, %v4339_v19  ;;  %v1623_v38 = vperm.slane %v1615_v35, %v4344_v27 }
 0x1e5   : > { %v1613_v41 = vsel %vm1496_vm2, %v1612_v34, %v1597_v24 }
 0x1e6   : > { %v1619_v42 = vperm.slane %v1613_v41, %v4344_v27  ;;  %v1624_v43 = vrot.slane %v1611_v37, 4  ;;  %v1627_v44 = vsel %vm1496_vm2, %v1611_v37, %v1626_v36  ;;  %v1638_v45 = vrot.slane %v1623_v38, 4 }
 0x1e7   : > { %v1635_v46 = vperm.slane %v1627_v44, %v4344_v27 }
 0x1e8   : > { %v1625_v47 = vsel %vm1496_vm2, %v1624_v43, %v1601_v26  ;;  %v1636_v48 = vrot.slane %v1619_v42, 4  ;;  %v1639_v49 = vsel %vm1496_vm2, 0.0, %v1638_v45  ;;  %v1493_v50 = vpop.permute.xlu0 %1492  ;;  %v1644_v61 = vsel %vm1496_vm2, %v1638_v45, %v1619_v42 }
 0x1e9   : > { %v1631_v52 = vperm.slane %v1625_v47, %v4344_v27  ;;  %v1642_v53 = vrot.slane %v1635_v46, 4  ;;  %v1649_v54 = vrot.slane %v1639_v49, 4  ;;  %v1506_v57 = vrot.slane %v1493_v50, 4 }
 0x1ea   : > { %v1637_v56 = vsel %vm1496_vm2, 0.0, %v1636_v48  ;;  %v1511_v58 = vperm.slane %v1493_v50, %v4339_v19  ;;  %v1648_v14 = vperm.slane %v1644_v61, %v4339_v19 }
 0x1eb   : > { %v1640_v59 = vrot.slane %v1631_v52, 4  ;;  %v1643_v60 = vsel %vm1496_vm2, 0.0, %v1642_v53  ;;  %v1650_v62 = vsel %vm1496_vm2, %v1649_v54, %v1637_v56  ;;  %v1507_v0 = vsel %vm1496_vm2, 0.0, %v1506_v57 }
 0x1ec   : > { %v1660_v63 = vrot.slane %v1643_v60, 4  ;;  %v1516_v1 = vrot.slane %v1511_v58, 4  ;;  %v1519_v2 = vsel %vm1496_vm2, %v1511_v58, %v1518_v51  ;;  %v1515_v5 = vperm.slane %v1507_v0, %v4339_v19 }
 0x1ed   : > { %v1641_v4 = vsel %vm1496_vm2, 0.0, %v1640_v59  ;;  %v1527_v6 = vperm.slane %v1519_v2, %v4344_v27  ;;  %v1654_v7 = vperm.slane %v1650_v62, %v4339_v19  ;;  %v1655_v22 = vsel %vm1496_vm2, %v1642_v53, %v1631_v52  ;;  %v3051_v2 = vld [vmem:[%s1138_s23] ss:$0 sm:$0xff]  ;;  %s4753_s23 = scalar_lea.vmem [#allocation20], %s4244_s3 }
 0x1ee   : > { %v1517_v8 = vsel %vm1496_vm2, %v1516_v1, %v1501_v39  ;;  %v1661_v9 = vsel %vm1496_vm2, %v1660_v63, %v1641_v4  ;;  %v1528_v11 = vrot.slane %v1515_v5, 4  ;;  %v1531_v12 = vsel %vm1496_vm2, %v1515_v5, %v1530_v55  ;;  %v1487_v4 = vpop.f32.mrf.mxu2 }
 0x1ef   : > { %v1523_v10 = vperm.slane %v1517_v8, %v4344_v27  ;;  %v1542_v13 = vrot.slane %v1527_v6, 4  ;;  %v1539_v15 = vperm.slane %v1531_v12, %v4344_v27  ;;  %v1665_v16 = vperm.slane %v1661_v9, %v4339_v19  ;;  %v3053_v12 = vld [vmem:[%s4237_s30] ss:$0 sm:$0xff] }
 0x1f0   : > { %v1666_v17 = vrot.slane %v1654_v7, 4  ;;  %v1529_v18 = vsel %vm1496_vm2, %v1528_v11, %v1505_v40  ;;  %v1659_v34 = vperm.slane %v1655_v22, %v4339_v19  ;;  %v1488_v5 = vadd.f32 %v3051_v2, %v1487_v4  ;;  %v3052_v7 = vld [vmem:[%s4237_s30 + $0x1] ss:$0 sm:$0xff]  ;;  %s4748_s30 = scalar_lea.vmem [#allocation17], %s4247_s25  ;;  %s4759_s25 = sld [smem:[#allocation49_spill]] }
 0x1f1   : > { %v1540_v20 = vrot.slane %v1523_v10, 4  ;;  %v1543_v21 = vsel %vm1496_vm2, 0.0, %v1542_v13  ;;  %v1535_v23 = vperm.slane %v1529_v18, %v4344_v27  ;;  %v1546_v24 = vrot.slane %v1539_v15, 4  ;;  %s4749_s2 = smov %s4748_s30 }
 0x1f2   : > { %v1553_v25 = vrot.slane %v1543_v21, 4  ;;  %v1548_v28 = vsel %vm1496_vm2, %v1542_v13, %v1523_v10  ;;  %v1667_v29 = vsel %vm1496_vm2, %v1666_v17, %v1648_v14  ;;  %v1672_v30 = vrot.slane %v1665_v16, 4  ;;  %1685 = vrot.lane.b32.xlu2 %v1488_v5, %s3752_s21 }
 0x1f3   : > { %v1541_v26 = vsel %vm1496_vm2, 0.0, %v1540_v20  ;;  %v1544_v31 = vrot.slane %v1535_v23, 4  ;;  %v1547_v32 = vsel %vm1496_vm2, 0.0, %v1546_v24  ;;  %v1671_v37 = vperm.slane %v1667_v29, %v4344_v27 }
 0x1f4   : > { %v1554_v33 = vsel %vm1496_vm2, %v1553_v25, %v1541_v26  ;;  %v1564_v36 = vrot.slane %v1547_v32, 4  ;;  %v1552_v39 = vperm.slane %v1548_v28, %v4339_v19  ;;  %v1559_v40 = vsel %vm1496_vm2, %v1546_v24, %v1535_v23 }
 0x1f5   : > { %v1558_v35 = vperm.slane %v1554_v33, %v4339_v19  ;;  %v1545_v38 = vsel %vm1496_vm2, 0.0, %v1544_v31  ;;  %v1673_v41 = vsel %vm1496_vm2, %v1672_v30, %v1659_v34  ;;  %v1680_v45 = vrot.slane %v1671_v37, 4 }
 0x1f6   : > { %v1565_v42 = vsel %vm1496_vm2, %v1564_v36, %v1545_v38  ;;  %v1677_v44 = vperm.slane %v1673_v41, %v4344_v27  ;;  %v1563_v50 = vperm.slane %v1559_v40, %v4339_v19  ;;  %v1489_v6 = vpop.f32.mrf.mxu2  ;;  %v1688_v20 = vrot.slane %v1488_v5, 4  ;;  %p2872_p11 = scmp.ne.s32.totalorder %s4759_s25, 1 }
 0x1f7   : > { %v1570_v43 = vrot.slane %v1558_v35, 4  ;;  %v1569_v46 = vperm.slane %v1565_v42, %v4339_v19  ;;  %v1693_v22 = vperm.slane %v1488_v5, %v4339_v19  ;;  %s4760_s19 = sld [smem:[#allocation74_spill]] (!%p2872_p11) }
 0x1f8   : > { %v1681_v47 = vsel %vm1496_vm2, %v1677_v44, %v1680_v45  ;;  %v1678_v48 = vrot.slane %v1677_v44, 4  ;;  %v1689_v21 = vsel %vm1496_vm2, 0.0, %v1688_v20  ;;  %s4761_s21 = sld [smem:[#allocation75_spill]] (!%p2872_p11) }
 0x1f9   : > { %v1571_v49 = vsel %vm1496_vm2, %v1570_v43, %v1552_v39  ;;  %v1683_v51 = vpack.c.bf16 %v1681_v47, %v1681_v47  ;;  %v1576_v53 = vrot.slane %v1569_v46, 4  ;;  %v1697_v23 = vperm.slane %v1689_v21, %v4339_v19 }
 0x1fa   : > { %v1575_v52 = vperm.slane %v1571_v49, %v4344_v27  ;;  %v1679_v54 = vsel %vm1496_vm2, %v1678_v48, %v1671_v37  ;;  %v1710_v24 = vrot.slane %v1693_v22, 4 }
 0x1fb   : > { %v1804_v55 = vsel %vm1780_vm3, %v1683_v51, 0  ;;  %v1682_v56 = vpack.c.bf16 %v1679_v54, %v1679_v54  ;;  %v1577_v57 = vsel %vm1496_vm2, %v1576_v53, %v1563_v50  ;;  %v1722_v29 = vrot.slane %v1697_v23, 4 }
 0x1fc   : > { %v1584_v58 = vrot.slane %v1575_v52, 4  ;;  %1813 = vmatpush.bf16.xpose.msrb.mxu0 %v1804_v55  ;;  %v1581_v59 = vperm.slane %v1577_v57, %v4344_v27 }
 0x1fd   : > { %v1785_v60 = vsel %vm1780_vm3, %v1682_v56, 0 }
 0x1fe   : > { %1794 = vmatpush.bf16.xpose.msra.mxu3 %v1785_v60  ;;  %v1585_v61 = vsel %vm1496_vm2, %v1581_v59, %v1584_v58  ;;  %v1582_v62 = vrot.slane %v1581_v59, 4 }
 0x1ff   : > { %v1587_v63 = vpack.c.bf16 %v1585_v61, %v1585_v61 }
 0x200   : > { %v1583_v0 = vsel %vm1496_vm2, %v1582_v62, %v1575_v52 }
 0x201   : > { %v1586_v1 = vpack.c.bf16 %v1583_v0, %v1583_v0 }
 0x203   : > { %2842 = vmatmul.msk.bf16.vlgmr.msrb.gmra.mxu0 %vm1780_vm3, %v1587_v63 }
 0x205   : > { %2841 = vmatmul.msk.bf16.vlgmr.msra.gmra.mxu3 %vm1780_vm3, %v1586_v1 }
 0x24c   : > { %v1686_v25 = vpop.permute.xlu2 %1685 }
 0x24d   : > { %v1698_v26 = vrot.slane %v1686_v25, 4  ;;  %v1703_v28 = vperm.slane %v1686_v25, %v4339_v19 }
 0x24f   : > { %v1699_v30 = vsel %vm1496_vm2, 0.0, %v1698_v26  ;;  %v1708_v31 = vrot.slane %v1703_v28, 4  ;;  %v1711_v32 = vsel %vm1496_vm2, %v1703_v28, %v1710_v24 }
 0x250   : > { %v1707_v33 = vperm.slane %v1699_v30, %v4339_v19  ;;  %v1719_v34 = vperm.slane %v1711_v32, %v4344_v27 }
 0x251   : > { %v1709_v35 = vsel %vm1496_vm2, %v1708_v31, %v1693_v22  ;;  %v2901_v31 = vld [vmem:[%s4748_s30 + $0x8] sm:$0xff] }
 0x252   : > { %v1715_v36 = vperm.slane %v1709_v35, %v4344_v27  ;;  %v1720_v37 = vrot.slane %v1707_v33, 4  ;;  %v1723_v38 = vsel %vm1496_vm2, %v1707_v33, %v1722_v29  ;;  %v1734_v39 = vrot.slane %v1719_v34, 4  ;;  %2020 = vmatpush.bf16.msrb.mxu3 %v2901_v31 }
 0x253   : > { %v1731_v40 = vperm.slane %v1723_v38, %v4344_v27 }
 0x254   : > { %v1721_v41 = vsel %vm1496_vm2, %v1720_v37, %v1697_v23  ;;  %v1732_v42 = vrot.slane %v1715_v36, 4  ;;  %v1735_v43 = vsel %vm1496_vm2, 0.0, %v1734_v39  ;;  %v1740_v48 = vsel %vm1496_vm2, %v1734_v39, %v1715_v36 }
 0x255   : > { %v1727_v44 = vperm.slane %v1721_v41, %v4344_v27  ;;  %v1738_v45 = vrot.slane %v1731_v40, 4  ;;  %v1745_v46 = vrot.slane %v1735_v43, 4  ;;  %v1744_v56 = vperm.slane %v1740_v48, %v4339_v19 }
 0x256   : > { %v1733_v47 = vsel %vm1496_vm2, 0.0, %v1732_v42 }
 0x257   : > { %v1736_v49 = vrot.slane %v1727_v44, 4  ;;  %v1739_v50 = vsel %vm1496_vm2, 0.0, %v1738_v45  ;;  %v1746_v51 = vsel %vm1496_vm2, %v1745_v46, %v1733_v47  ;;  %v1751_v52 = vsel %vm1496_vm2, %v1738_v45, %v1727_v44 }
 0x258   : > { %v1756_v53 = vrot.slane %v1739_v50, 4  ;;  %v1750_v54 = vperm.slane %v1746_v51, %v4339_v19  ;;  %v1755_v59 = vperm.slane %v1751_v52, %v4339_v19 }
 0x259   : > { %v1737_v55 = vsel %vm1496_vm2, 0.0, %v1736_v49 }
 0x25a   : > { %v1757_v57 = vsel %vm1496_vm2, %v1756_v53, %v1737_v55  ;;  %v1762_v58 = vrot.slane %v1750_v54, 4 }
 0x25b   : > { %v1761_v60 = vperm.slane %v1757_v57, %v4339_v19 }
 0x25c   : > { %v1763_v61 = vsel %vm1496_vm2, %v1762_v58, %v1744_v56 }
 0x25d   : > { %v1768_v62 = vrot.slane %v1761_v60, 4  ;;  %v1767_v0 = vperm.slane %v1763_v61, %v4344_v27 }
 0x25f   : > { %v1769_v63 = vsel %vm1496_vm2, %v1768_v62, %v1755_v59 }
 0x260   : > { %v1773_v1 = vperm.slane %v1769_v63, %v4344_v27 }
 0x262   : > { %v1774_v2 = vrot.slane %v1773_v1, 4 }
 0x264   : > { %v1775_v4 = vsel %vm1496_vm2, %v1774_v2, %v1767_v0 }
 0x265   : > { %v1778_v5 = vpack.c.bf16 %v1775_v4, %v1775_v4 }
 0x267   : > { %v1861_v6 = vsel %vm1859_vm5, %v1778_v5, 0 }
 0x268   : > { %1870 = vmatpush.bf16.msrb.mxu1 %v1861_v6 }
 0x280   : > { %v1815_v8 = vpop.f32.mrf.mxu0 }
 0x281   : > { %v1820_v9 = vmul.f32 0.25, %v1815_v8 }
 0x283   : > { %v4415_v10 = vadd.f32 %v3052_v7, %v1820_v9  ;;  %v1776_v7 = vrot.slane %v1767_v0, 4 }
 0x285   : > { %v1835_v11 = vsel %vm1831_vm4, %v4415_v10, -inf  ;;  %v1777_v8 = vsel %vm1496_vm2, %v1773_v1, %v1776_v7 }
 0x286   : > { %1836 = vmax.xlane.f32.xlu1 %v1835_v11  ;;  %v1779_v9 = vpack.c.bf16 %v1777_v8, %v1777_v8 }
 0x288   : > { %v1796_v13 = vpop.f32.mrf.mxu3  ;;  %v1817_v14 = vpop.f32.mrf.mxu0  ;;  %v1880_v11 = vsel %vm1859_vm5, %v1779_v9, 0 }
 0x289   : > { %v1819_v15 = vmul.f32 0.25, %v1796_v13  ;;  %1889 = vmatpush.bf16.msrb.mxu2 %v1880_v11 }
 0x28b   : > { %v4420_v16 = vadd.f32 %v3053_v12, %v1819_v15 }
 0x28d   : > { %v1832_v17 = vsel %vm1831_vm4, %v4420_v16, -inf }
 0x28e   : > { %1833 = vmax.xlane.f32.xlu1 %v1832_v17 }
 0x290   : > { %v1798_v18 = vpop.f32.mrf.mxu3 }
 0x2f9   : > { %v1837_v12 = vpop.xlane.xlu1 %1836 }
 0x2fa   : > { %v1839_v13 = vsub.f32 %v4415_v10, %v1837_v12 }
 0x2fc   : > { %v1842_v14 = vmul.f32 1.442695, %v1839_v13 }
 0x2fe   : > { %3061 = vpow2.f32 %v1842_v14 }
 0x301   : > { %v1834_v15 = vpop.xlane.xlu1 %1833 }
 0x302   : > { %v1838_v17 = vsub.f32 %v4420_v16, %v1834_v15 }
 0x304   : > { %v3062_v18 = vpop.eup %3061  ;;  %v1840_v20 = vmul.f32 1.442695, %v1838_v17 }
 0x305   : > { %v1847_v21 = vsel %vm1831_vm4, %v3062_v18, 0.0 }
 0x306   : > { %3063 = vpow2.f32 %v1840_v20  ;;  %1848 = vadd.xlane.f32.xlu2 %v1847_v21 }
 0x30c   : > { %v3064_v22 = vpop.eup %3063 }
 0x30d   : > { %v1844_v23 = vsel %vm1831_vm4, %v3064_v22, 0.0 }
 0x30e   : > { %1845 = vadd.xlane.f32.xlu0 %v1844_v23 }
 0x379   : > { %v1849_v24 = vpop.xlane.xlu2 %1848 }
 0x37a   : > { %3065 = vrcp.f32 %v1849_v24  ;;  %v2900_v24 = vld [vmem:[%s4749_s2] sm:$0xff]  ;;  %s4762_s2 = sld [smem:[#allocation76_spill]] (!%p2872_p11) }
 0x37b   : > { %2021 = vmatpush.bf16.msrb.mxu3 %v2900_v24 }
 0x380   : > { %v3066_v25 = vpop.eup %3065 }
 0x381   : > { %v1853_v10 = vmul.f32 %v3066_v25, %v3062_v18  ;;  %v1846_v26 = vpop.xlane.xlu0 %1845 }
 0x382   : > { %3067 = vrcp.f32 %v1846_v26  ;;  %v3054_v26 = vld [vmem:[%s4750_s5] ss:$0 sm:$0xff] }
 0x383   : > { %v1855_v28 = vpack.c.bf16 %v1853_v10, %v1853_v10 }
 0x385   : > { %2844 = vmatmul.msk.bf16.vlgmr.msrb.gmra.mxu2 %vm1831_vm4, %v1855_v28 }
 0x388   : > { %v3068_v16 = vpop.eup %3067 }
 0x389   : > { %v1852_v29 = vmul.f32 %v3068_v16, %v3064_v22 }
 0x38b   : > { %v1854_v30 = vpack.c.bf16 %v1852_v29, %v1852_v29 }
 0x38d   : > { %2843 = vmatmul.msk.bf16.vlgmr.msrb.gmra.mxu1 %vm1831_vm4, %v1854_v30 }
 0x408   : > { %v1891_v32 = vpop.f32.mrf.mxu2 }
 0x409   : > { %v1905_v33 = vrot.slane %v1891_v32, 4  ;;  %v1910_v34 = vperm.slane %v1891_v32, %v4339_v19 }
 0x40a   : > { %v1872_v35 = vpop.f32.mrf.mxu1 }
 0x40b   : > { %v1906_v36 = vsel %vm1496_vm2, 0.0, %v1905_v33  ;;  %v1915_v37 = vrot.slane %v1910_v34, 4  ;;  %v1895_v38 = vrot.slane %v1872_v35, 4  ;;  %v1900_v39 = vperm.slane %v1872_v35, %v4339_v19 }
 0x40c   : > { %v1914_v40 = vperm.slane %v1906_v36, %v4339_v19  ;;  %v3756_v33 = vmov 32.0  }
 0x40d   : > { %v1896_v41 = vsel %vm1496_vm2, 0.0, %v1895_v38  ;;  %v1916_v42 = vsel %vm1496_vm2, %v1915_v37, %v1900_v39  ;;  %v1917_v43 = vrot.slane %v1900_v39, 4  ;;  %3069 = vrcp.f32 %v3756_v33  ;;  %v2903_v39 = vld [vmem:[%s4751_s26 + $0x8] sm:$0xff]  ;;  %v3060_v33 = vld [vmem:[%s1231_s9] ss:$0 sm:$0xff] }
 0x40e   : > { %v1927_v44 = vrot.slane %v1914_v40, 4  ;;  %v1904_v45 = vperm.slane %v1896_v41, %v4339_v19  ;;  %v1922_v46 = vperm.slane %v1916_v42, %v4344_v27  ;;  %2100 = vmatpush.bf16.msra.mxu0 %v2903_v39 }
 0x40f   : > { %v1918_v47 = vsel %vm1496_vm2, %v1910_v34, %v1917_v43 }
 0x410   : > { %v1926_v48 = vperm.slane %v1918_v47, %v4344_v27  ;;  %v1928_v49 = vsel %vm1496_vm2, %v1927_v44, %v1904_v45  ;;  %v1929_v50 = vrot.slane %v1904_v45, 4  ;;  %v1893_v51 = vpop.f32.mrf.mxu2  ;;  %v1939_v54 = vrot.slane %v1922_v46, 4 }
 0x411   : > { %v1934_v52 = vperm.slane %v1928_v49, %v4344_v27 }
 0x412   : > { %v1930_v53 = vsel %vm1496_vm2, %v1914_v40, %v1929_v50  ;;  %v1941_v55 = vrot.slane %v1926_v48, 4  ;;  %v1874_v56 = vpop.f32.mrf.mxu1  ;;  %v1940_v62 = vsel %vm1496_vm2, 0.0, %v1939_v54  ;;  %v2902_v40 = vld [vmem:[%s4752_s10] sm:$0xff]  ;;  %s4763_s10 = sld [smem:[#allocation77_spill]] (!%p2872_p11) }
 0x413   : > { %v1938_v57 = vperm.slane %v1930_v53, %v4344_v27  ;;  %v1943_v59 = vrot.slane %v1934_v52, 4  ;;  %v3070_v34 = vpop.eup %3069  ;;  %2101 = vmatpush.bf16.msra.mxu0 %v2902_v40  ;;  %v3055_v56 = vld [vmem:[%s4753_s23] ss:$0 sm:$0xff] }
 0x414   : > { %v1942_v58 = vsel %vm1496_vm2, 0.0, %v1941_v55  ;;  %v1947_v0 = vsel %vm1496_vm2, %v1941_v55, %v1922_v46  ;;  %v2034_v35 = vmul.f32 32.0, %v3070_v34  ;;  %vm2038_vm6 = vweird.f32 %v3070_v34 }
 0x415   : > { %v1945_v60 = vrot.slane %v1938_v57, 4  ;;  %v1952_v61 = vrot.slane %v1942_v58, 4  ;;  %v1944_v5 = vsel %vm1496_vm2, 0.0, %v1943_v59  ;;  %v1951_v6 = vperm.slane %v1947_v0, %v4339_v19  ;;  %v3056_v59 = vld [vmem:[%s4754_s0] ss:$0 sm:$0xff] }
 0x416   : > { %v2035_v36 = vsub.f32 1.0, %v2034_v35  ;;  %v2904_v0 = vld [vmem:[%s4756_s17] sm:$0xff] }
 0x417   : > { %v1946_v63 = vsel %vm1496_vm2, 0.0, %v1945_v60  ;;  %v1953_v1 = vsel %vm1496_vm2, %v1952_v61, %v1940_v62  ;;  %v1958_v7 = vsel %vm1496_vm2, %v1945_v60, %v1934_v52 }
 0x418   : > { %v1963_v2 = vrot.slane %v1946_v63, 4  ;;  %v1957_v4 = vperm.slane %v1953_v1, %v4339_v19  ;;  %v1962_v13 = vperm.slane %v1958_v7, %v4339_v19  ;;  %v2036_v37 = vmul.f32 %v3070_v34, %v2035_v36  ;;  %v2905_v63 = vld [vmem:[%s4755_s1 + $0x8] sm:$0xff]  ;;  %v3057_v1 = vld [vmem:[%s4757_s7] ss:$0 sm:$0xff] }
 0x419   : > { %2138 = vmatpush.bf16.msra.mxu1 %v2905_v63 }
 0x41a   : > { %v1964_v8 = vsel %vm1496_vm2, %v1963_v2, %v1944_v5  ;;  %v1969_v9 = vrot.slane %v1957_v4, 4  ;;  %v2037_v38 = vadd.f32 %v3070_v34, %v2036_v37 }
 0x41b   : > { %v1968_v11 = vperm.slane %v1964_v8, %v4339_v19  ;;  %v3058_v8 = vld [vmem:[%s4758_s22] ss:$0 sm:$0xff] }
 0x41c   : > { %v1970_v12 = vsel %vm1496_vm2, %v1969_v9, %v1951_v6 }
 0x41d   : > { %v1974_v14 = vperm.slane %v1970_v12, %v4344_v27  ;;  %v1975_v15 = vrot.slane %v1968_v11, 4  ;;  %2139 = vmatpush.bf16.msra.mxu1 %v2904_v0 }
 0x41f   : > { %v1976_v17 = vsel %vm1496_vm2, %v1975_v15, %v1962_v13  ;;  %v1983_v18 = vrot.slane %v1974_v14, 4 }
 0x420   : > { %v1980_v20 = vperm.slane %v1976_v17, %v4344_v27 }
 0x422   : > { %v1984_v21 = vsel %vm1496_vm2, %v1980_v20, %v1983_v18  ;;  %v1981_v22 = vrot.slane %v1980_v20, 4 }
 0x423   : > { %1986 = vrot.lane.b32.xlu1 %v1984_v21, %s3755_s29 }
 0x424   : > { %v1982_v23 = vsel %vm1496_vm2, %v1981_v22, %v1974_v14 }
 0x495   : > { %v1987_v19 = vpop.permute.xlu1 %1986 }
 0x496   : > { %v1989_v25 = vsel %vm1780_vm3, %v1982_v23, %v1987_v19 }
 0x497   : > { %v1990_v10 = vpack.c.bf16 %v1989_v25, %v1989_v25 }
 0x499   : > { %2853 = vmatmul.msk.bf16.vlgmr.msrb.gmra.mxu3 %vm1408_vm1, %v1990_v10 }
 0x51c   : > { %v2023_v28 = vpop.f32.mrf.mxu3 }
 0x51d   : > { %v2024_v27 = vadd.f32 %v3054_v26, %v2023_v28 }
 0x51f   : > { %v2027_v16 = vadd.f32 %v2024_v27, %v4320_v3  ;;  %v4507_v3 = vsel %vm2038_vm6, %v3070_v34, %v2037_v38 }
 0x521   : > { %v2030_v29 = vsel %vm1408_vm1, %v2027_v16, 0.0  ;;  %v2041_v30 = vmul.f32 %v2027_v16, %v2027_v16 }
 0x522   : > { %2031 = vadd.xlane.f32.xlu1 %v2030_v29 }
 0x523   : > { %v2042_v31 = vsel %vm1408_vm1, %v2041_v30, 0.0 }
 0x524   : > { %v2025_v32 = vpop.f32.mrf.mxu3  ;;  %2043 = vadd.xlane.f32.xlu2 %v2042_v31  ;;  %v3059_v31 = vld [vmem:[%s1222_s20] ss:$0 sm:$0xff] }
 0x595   : > { %v2032_v41 = vpop.xlane.xlu1 %2031 }
 0x596   : > { %v2040_v42 = vmul.f32 %v4507_v3, %v2032_v41 }
 0x597   : > { %v2044_v43 = vpop.xlane.xlu2 %2043 }
 0x598   : > { %v2046_v44 = vmul.f32 %v2040_v42, %v2040_v42  ;;  %v2045_v45 = vmul.f32 %v2044_v43, %v4507_v3  ;;  %v2049_v55 = vsub.f32 %v2027_v16, %v2040_v42 }
 0x59a   : > { %v2047_v46 = vsub.f32 %v2045_v45, %v2046_v44 }
 0x59c   : > { %v2048_v47 = vmax.f32 %v2047_v46, 0.0 }
 0x59e   : > { %v2050_v48 = vadd.f32 1e-05, %v2048_v47 }
 0x5a0   : > { %3071 = vrsqrt.f32 %v2050_v48  ;;  %vm2057_vm8 = vweird.f32 %v2050_v48 }
 0x5a6   : > { %v3072_v49 = vpop.eup %3071 }
 0x5a7   : > { %v2052_v50 = vmul.f32 %v3072_v49, %v2050_v48  ;;  %vm2058_vm7 = vweird.f32 %v3072_v49 }
 0x5a8   : > { %vm2059_vm9 = vmor %vm2057_vm8, %vm2058_vm7 }
 0x5a9   : > { %v2053_v51 = vmul.f32 %v3072_v49, %v2052_v50 }
 0x5ab   : > { %v2054_v52 = vmul.f32 0.5, %v2053_v51 }
 0x5ad   : > { %v2055_v53 = vsub.f32 1.5, %v2054_v52 }
 0x5af   : > { %v2056_v54 = vmul.f32 %v3072_v49, %v2055_v53 }
 0x5b1   : > { %v2060_v57 = vsel %vm2059_vm9, %v3072_v49, %v2056_v54 }
 0x5b2   : > { %v2061_v58 = vmul.f32 %v2060_v57, %v2049_v55 }
 0x5b4   : > { %v2065_v60 = vmul.f32 %v3055_v56, %v2061_v58 }
 0x5b6   : > { %v2069_v61 = vadd.f32 %v3056_v59, %v2065_v60 }
 0x5b8   : > { %v2070_v62 = vpack.c.bf16 %v2069_v61, %v2069_v61 }
 0x5ba   : > { %2862 = vmatmul.msk.bf16.vlgmr.msra.gmra.mxu0 %vm1408_vm1, %v2070_v62 }
 0x637   : > { %v2103_v2 = vpop.f32.mrf.mxu0 }
 0x638   : > { %v2104_v4 = vadd.f32 %v3057_v1, %v2103_v2 }
 0x63a   : > { %v2107_v5 = vmax.f32 %v2104_v4, 0.0 }
 0x63c   : > { %v2108_v6 = vpack.c.bf16 %v2107_v5, %v2107_v5 }
 0x63e   : > { %2871 = vmatmul.msk.bf16.vlgmr.msra.gmra.mxu1 %vm1408_vm1, %v2108_v6 }
 0x63f   : > { %v2105_v7 = vpop.f32.mrf.mxu0 }
 0x6bb   : > { %v2141_v9 = vpop.f32.mrf.mxu1 }
 0x6bc   : > { %v2142_v11 = vadd.f32 %v3058_v8, %v2141_v9 }
 0x6be   : > { %v2145_v12 = vadd.f32 %v2142_v11, %v2069_v61 }
 0x6c0   : > { %v2148_v13 = vsel %vm1408_vm1, %v2145_v12, 0.0  ;;  %v2152_v14 = vmul.f32 %v2145_v12, %v2145_v12 }
 0x6c1   : > { %2149 = vadd.xlane.f32.xlu2 %v2148_v13 }
 0x6c2   : > { %v2153_v15 = vsel %vm1408_vm1, %v2152_v14, 0.0 }
 0x6c3   : > { %v2143_v17 = vpop.f32.mrf.mxu1  ;;  %2154 = vadd.xlane.f32.xlu0 %v2153_v15 }
 0x734   : > { %v2150_v18 = vpop.xlane.xlu2 %2149 }
 0x735   : > { %v2151_v20 = vmul.f32 %v2150_v18, %v4507_v3 }
 0x736   : > { %v2155_v21 = vpop.xlane.xlu0 %2154 }
 0x737   : > { %v2157_v22 = vmul.f32 %v2151_v20, %v2151_v20  ;;  %v2156_v23 = vmul.f32 %v2155_v21, %v4507_v3  ;;  %v2160_v30 = vsub.f32 %v2145_v12, %v2151_v20 }
 0x739   : > { %v2158_v24 = vsub.f32 %v2156_v23, %v2157_v22 }
 0x73b   : > { %v2159_v19 = vmax.f32 %v2158_v24, 0.0 }
 0x73d   : > { %v2161_v25 = vadd.f32 1e-05, %v2159_v19 }
 0x73f   : > { %3073 = vrsqrt.f32 %v2161_v25  ;;  %vm2168_vm11 = vweird.f32 %v2161_v25 }
 0x745   : > { %v3074_v10 = vpop.eup %3073 }
 0x746   : > { %v2163_v26 = vmul.f32 %v3074_v10, %v2161_v25  ;;  %vm2169_vm10 = vweird.f32 %v3074_v10 }
 0x747   : > { %vm2170_vm12 = vmor %vm2168_vm11, %vm2169_vm10 }
 0x748   : > { %v2164_v28 = vmul.f32 %v3074_v10, %v2163_v26 }
 0x74a   : > { %v2165_v27 = vmul.f32 0.5, %v2164_v28 }
 0x74c   : > { %v2166_v16 = vsub.f32 1.5, %v2165_v27 }
 0x74e   : > { %v2167_v29 = vmul.f32 %v3074_v10, %v2166_v16 }
 0x750   : > { %v2171_v32 = vsel %vm2170_vm12, %v3074_v10, %v2167_v29 }
 0x751   : > { %v2172_v34 = vmul.f32 %v2171_v32, %v2160_v30 }
 0x753   : > { %v2176_v35 = vmul.f32 %v3059_v31, %v2172_v34  ;;  %2185 = sbr.rel (%p2872_p11) target bundleno = 2353 (0x931), region = 192 }
 0x755   : > { %v2180_v36 = vadd.f32 %v3060_v33, %v2176_v35 }
 0x757   : > { %2181 = vst.msk [vmem:[#allocation2] sm:$0xff] %vm1408_vm1, %v2180_v36 }
 0x758   : > { %v2187_v38 = vld [vmem:[%s4249_s8] sm:$0x3]  ;;  %v2907_v39 = vld [vmem:[%s4760_s19 + $0x8] sm:$0xff]  ;;  %v2906_v41 = vld [vmem:[%s4760_s19] sm:$0xff]  ;;  %v3757_v44 = vmov 1.4142135  }
 0x759   : > { %v2188_v40 = vunpack.c.l.bf16 %v2187_v38  ;;  %2242 = vmatpush.bf16.msra.mxu1 %v2907_v39  ;;  %3078 = vrcp.f32 %v3757_v44  ;;  %v3075_v50 = vld [vmem:[%s4761_s21] ss:$0 sm:$0xff]  ;;  %vm2302_vm2 = vcmask 257024  }
 0x75d   : > { %2243 = vmatpush.bf16.msra.mxu1 %v2906_v41 }
 0x75e   : > { %v2186_v37 = vld [vmem:[#allocation2] sm:$0xff] }
 0x75f   : > { %2207 = vmatpush.msra.mxu0 %v2186_v37  ;;  %v3079_v45 = vpop.eup %3078 }
 0x760   : > { %2873 = vmatmul.msk.f32.vlgmr.msra.gmra.mxu0 %vm1831_vm4, %v2188_v40  ;;  %v2251_v46 = vmul.f32 1.4142135, %v3079_v45  ;;  %vm2255_vm13 = vweird.f32 %v3079_v45 }
 0x762   : > { %v2252_v47 = vsub.f32 1.0, %v2251_v46 }
 0x764   : > { %v2253_v48 = vmul.f32 %v3079_v45, %v2252_v47 }
 0x766   : > { %v2254_v49 = vadd.f32 %v3079_v45, %v2253_v48 }
 0x768   : > { %v2256_v52 = vsel %vm2255_vm13, %v3079_v45, %v2254_v49  ;;  %v3076_v49 = vld [vmem:[%s4762_s2] ss:$0 sm:$0xff] }
 0x7dd   : > { %v2209_v42 = vpop.f32.mrf.mxu0 }
 0x7de   : > { %v2212_v43 = vpack.c.bf16 %v2209_v42, %v2209_v42 }
 0x7e0   : > { %2882 = vmatmul.msk.bf16.vlgmr.msra.gmra.mxu1 %vm1408_vm1, %v2212_v43 }
 0x85d   : > { %v2245_v51 = vpop.f32.mrf.mxu1 }
 0x85e   : > { %v2246_v53 = vadd.f32 %v3075_v50, %v2245_v51  ;;  %v3077_v50 = vld [vmem:[%s4763_s10] ss:$0 sm:$0xff] }
 0x860   : > { %v2257_v54 = vmul.f32 %v2256_v52, %v2246_v53  ;;  %v2249_v16 = vmul.f32 0.5, %v2246_v53 }
 0x862   : > { %v2258_v55 = vmul.f32 %v2257_v54, %v2257_v54 }
 0x864   : > { %v2259_v56 = vmin.f32 %v2258_v55, 16.0 }
 0x865   : > { %v2247_v57 = vpop.f32.mrf.mxu1 }
 0x866   : > { %v2260_v58 = vmul.f32 2.1237322e-06, %v2259_v56  ;;  %v2271_v59 = vmul.f32 3.8918573e-05, %v2259_v56 }
 0x868   : > { %v2261_v60 = vadd.f32 0.00028619796, %v2260_v58  ;;  %v2272_v61 = vadd.f32 0.001143296, %v2271_v59 }
 0x86a   : > { %v2262_v62 = vmul.f32 %v2261_v60, %v2259_v56  ;;  %v2273_v63 = vmul.f32 %v2272_v61, %v2259_v56 }
 0x86c   : > { %v2274_v0 = vadd.f32 0.014752088, %v2273_v63  ;;  %v2263_v1 = vadd.f32 0.0036580483, %v2262_v62 }
 0x86e   : > { %v2275_v2 = vmul.f32 %v2274_v0, %v2259_v56  ;;  %v2264_v5 = vmul.f32 %v2263_v1, %v2259_v56 }
 0x870   : > { %v2276_v4 = vadd.f32 0.112945676, %v2275_v2  ;;  %v2265_v8 = vadd.f32 0.05243302, %v2264_v5 }
 0x872   : > { %v2277_v6 = vmul.f32 %v2276_v4, %v2259_v56  ;;  %v2266_v12 = vmul.f32 %v2265_v8, %v2259_v56 }
 0x874   : > { %v2278_v7 = vadd.f32 0.4994258, %v2277_v6  ;;  %v2267_v13 = vadd.f32 0.18741608, %v2266_v12 }
 0x876   : > { %v2279_v9 = vmul.f32 %v2278_v7, %v2259_v56  ;;  %v2268_v15 = vmul.f32 %v2267_v13, %v2259_v56 }
 0x878   : > { %v2280_v11 = vadd.f32 1.0, %v2279_v9  ;;  %v2269_v21 = vadd.f32 1.1283791, %v2268_v15 }
 0x87a   : > { %3080 = vrcp.f32 %v2280_v11  ;;  %v2292_v20 = vand.u32 2147483648, %v2280_v11  ;;  %v2290_v23 = vand.u32 2147483647, %v2280_v11  ;;  %vm2286_vm15 = vweird.f32 %v2280_v11 }
 0x87b   : > { %v2270_v25 = vmul.f32 %v2269_v21, %v2257_v54 }
 0x87c   : > { %v2293_v19 = vor.u32 1.1754944e-38, %v2292_v20  ;;  %vm2291_vm1 = vcmp.eq.f32.partialorder %v2290_v23, 8.507059e+37 }
 0x880   : > { %v3081_v14 = vpop.eup %3080 }
 0x881   : > { %v2282_v17 = vmul.f32 %v3081_v14, %v2280_v11  ;;  %vm2287_vm14 = vweird.f32 %v3081_v14 }
 0x882   : > { %vm2288_vm0 = vmor %vm2286_vm15, %vm2287_vm14 }
 0x883   : > { %v2283_v18 = vsub.f32 1.0, %v2282_v17 }
 0x885   : > { %v2284_v22 = vmul.f32 %v3081_v14, %v2283_v18 }
 0x887   : > { %v2285_v24 = vadd.f32 %v3081_v14, %v2284_v22 }
 0x889   : > { %v2289_v10 = vsel %vm2288_vm0, %v3081_v14, %v2285_v24 }
 0x88a   : > { %v2294_v26 = vsel %vm2291_vm1, %v2293_v19, %v2289_v10 }
 0x88b   : > { %v2295_v28 = vmul.f32 %v2294_v26, %v2270_v25 }
 0x88d   : > { %v2883_v27 = vclamps-f32 %v2295_v28, 1.0 }
 0x88f   : > { %v2298_v29 = vadd.f32 1.0, %v2883_v27 }
 0x891   : > { %v2299_v30 = vmul.f32 %v2298_v29, %v2249_v16 }
 0x893   : > { %v2303_v31 = vsel %vm2302_vm2, %v2299_v30, 0.0  ;;  %v2307_v32 = vmul.f32 %v2299_v30, %v2299_v30 }
 0x894   : > { %2304 = vadd.xlane.f32.xlu0 %v2303_v31 }
 0x895   : > { %v2308_v33 = vsel %vm2302_vm2, %v2307_v32, 0.0 }
 0x89c   : > { %2309 = vadd.xlane.f32.xlu0 %v2308_v33 }
 0x907   : > { %v2305_v34 = vpop.xlane.xlu0 %2304 }
 0x908   : > { %v2306_v35 = vmul.f32 %v2305_v34, %v4507_v3 }
 0x90a   : > { %v2312_v37 = vmul.f32 %v2306_v35, %v2306_v35  ;;  %v2315_v48 = vsub.f32 %v2299_v30, %v2306_v35 }
 0x90f   : > { %v2310_v36 = vpop.xlane.xlu0 %2309 }
 0x910   : > { %v2311_v38 = vmul.f32 %v2310_v36, %v4507_v3 }
 0x912   : > { %v2313_v39 = vsub.f32 %v2311_v38, %v2312_v37 }
 0x914   : > { %v2314_v40 = vmax.f32 %v2313_v39, 0.0 }
 0x916   : > { %v2316_v41 = vadd.f32 1e-12, %v2314_v40 }
 0x918   : > { %3082 = vrsqrt.f32 %v2316_v41  ;;  %vm2323_vm4 = vweird.f32 %v2316_v41 }
 0x91e   : > { %v3083_v42 = vpop.eup %3082 }
 0x91f   : > { %v2318_v43 = vmul.f32 %v3083_v42, %v2316_v41  ;;  %vm2324_vm3 = vweird.f32 %v3083_v42 }
 0x920   : > { %vm2325_vm5 = vmor %vm2323_vm4, %vm2324_vm3 }
 0x921   : > { %v2319_v44 = vmul.f32 %v3083_v42, %v2318_v43 }
 0x923   : > { %v2320_v45 = vmul.f32 0.5, %v2319_v44 }
 0x925   : > { %v2321_v46 = vsub.f32 1.5, %v2320_v45 }
 0x927   : > { %v2322_v47 = vmul.f32 %v3083_v42, %v2321_v46 }
 0x929   : > { %v2326_v3 = vsel %vm2325_vm5, %v3083_v42, %v2322_v47 }
 0x92a   : > { %v2327_v51 = vmul.f32 %v2326_v3, %v2315_v48 }
 0x92c   : > { %v2331_v52 = vmul.f32 %v3076_v49, %v2327_v51 }
 0x92e   : > { %v2335_v53 = vadd.f32 %v3077_v50, %v2331_v52 }
 0x930   : > { %2336 = vst.msk [vmem:[%s4312_s4] sm:$0xf] %vm2302_vm2, %v2335_v53 }
 0x931 PF: > { %s4764_s23 = sld [smem:[#allocation50_spill]]  ;;  %s2350_s18 = sshll.u32 %s4312_s4, 4  ;;  %s2351_s18 = int_to_ptr.vmem [resolvable:$true] %s2350_s18 }
 0x932   : > { %s4766_s22 = sld [smem:[#allocation78_spill]]  ;;  %s2338_s3 = scalar_lea.sflag [#allocation5], %s4222_s28 }
 0x937   : > { %s2885_s1 = sshll.u32 %s4764_s23, 2 }
 0x938   : > { %s2348_s25 = scalar_lea.hbm %s4766_s22, %s2885_s1  ;;  %s3608_s30 = scalar_lea.hbm %s4766_s22, 8 }
 0x939   : > { %s2352_s24 = sshll.u32 %s2348_s25, 4  ;;  %s2353_s24 = int_to_ptr.hbm [resolvable:$true] %s2352_s24 }
 0x93a   : > { %s3602_s9 = sshra.s32 %s2353_s24, 4  ;;  %s3603_s9 = int_to_ptr.hbm [resolvable:$true] %s3602_s9 }
 0x93b   : > { %s3604_s8 = scalar_lea.hbm %s3603_s9, 4  ;;  %p3609_p5 = scmp.lt.s32.totalorder %s3603_s9, %s4766_s22 }
 0x93c   : > { %p3605_p12 = scmp.ne.s32.totalorder %s3603_s9, %s3604_s8  ;;  %p3610_p8 = scmp.lt.s32.totalorder %s3608_s30, %s3604_s8 }
 0x93e   : > { %p3606_p13 = pnand %p3605_p12, %p4000_p4  ;;  %p3611_p2 = por %p3610_p8, %p3609_p5 }
 0x940   : > { %p3607_p0 = pneg %p3606_p13 }
 0x942   : > { %p3612_p1 = pnand %p3611_p2, %p3607_p0 }
 0x944   : > { %3615 = shalt.err (!%p3612_p1)
}
 0x945   : > { %2944 = dma.vmem_to_hbm [thread:$0]  (%p4000_p4), %s2351_s18, 64, %s2353_s24, %s2338_s3  }
 0x946 PF: > { %s4767_s28 = sld [smem:[#allocation51_spill]] }
 0x947   : > { %s4768_s4 = sld [smem:[#allocation46_spill]] }
 0x94c   : > { %p2950_p3 = scmp.ge.s32.totalorder %s4767_s28, 2 }
 0x94d   : > { %s2364_s26 = sand.u32 1, %s4768_s4  }
 0x94e   : > { %p2947_p6 = pnand %p2950_p3, %p4007_p10  ;;  %s2365_s10 = scalar_lea.sflag [#allocation5], %s2364_s26 }
 0x950   : > { %p2948_p7 = pneg %p2947_p6 }
 0x952   : > { %3701 = dma.done.wait (%p2948_p7), %s2365_s10, 64  }
 0x953   : > { %3703 = vsyncadd (%p2948_p7), %s2365_s10, 4294967232  ;;  %s66_s7 = sadd.s32 1, %s4767_s28   ;;  %s4770_s4 = sld [smem:[#allocation44_spill]] }
 0x954   : > { %p63_p9 = scmp.ge.s32.totalorder %s66_s7, 6   ;;  %s4771_s30 = sld [smem:[#allocation45_spill]] }
 0x955   : > { %s4772_s24 = sld [smem:[#allocation56_spill]]  ;;  %s4778_s26 = smov %s3738_s6 }
 0x956   : > { %s4773_s25 = sld [smem:[#allocation47_spill]]  ;;  %s4779_s2 = smov %s3742_s27 }
 0x957   : > { %s4774_s5 = sld [smem:[#allocation48_spill]] }
 0x958   : > { %s4775_s1 = sld [smem:[#allocation57_spill]] }
 0x959   : > { %s4776_s23 = sld [smem:[#allocation53_spill]] }
 0x95a   : > { %s4777_s0 = sld [smem:[#allocation54_spill]] }
 0x95c   :  { %65 = sbr.rel (!%p63_p9) target bundleno = 46 (0x2e), region = 373 }
 0x95f   : > { %s4780_s6 = smov %s4776_s23 }
 0x960   : > { %s4781_s27 = smov %s4777_s0 }
 0x961   :  { %2371 = vsyncpa [#allocation4], 1 }
 0x962   :  { %2373 = vsyncpa [#allocation4 + $0x1], 1 }
 0x963   :  { %2374 = vsyncpa [#allocation7], 1 }
 0x964   :  { %2376 = vsyncpa [#allocation7 + $0x1], 1 }
 0x965   :  { %2377 = vsyncpa [#allocation10], 1 }
 0x966   :  { %2379 = vsyncpa [#allocation10 + $0x1], 1 }
 0x967   :  { %2380 = vsyncpa [#allocation13], 1 }
 0x968   :  { %2382 = vsyncpa [#allocation13 + $0x1], 1 }
 0x969   :  { %2383 = vsyncpa [#allocation16], 1 }
 0x96a   :  { %2385 = vsyncpa [#allocation16 + $0x1], 1 }
 0x96b   :  { %2386 = vsyncpa [#allocation19], 1 }
 0x96c   :  { %2388 = vsyncpa [#allocation19 + $0x1], 1 }
 0x96d   :  { %2389 = vsyncpa [#allocation22], 1 }
 0x96e   :  { %2391 = vsyncpa [#allocation22 + $0x1], 1 }
 0x96f   :  { %2392 = vsyncpa [#allocation25], 1 }
 0x970   :  { %2394 = vsyncpa [#allocation25 + $0x1], 1 }
 0x971   :  { %2395 = vsyncpa [#allocation28], 1 }
 0x972   :  { %2397 = vsyncpa [#allocation28 + $0x1], 1 }
 0x973   :  { %2398 = vsyncpa [#allocation31], 1 }
 0x974   :  { %2400 = vsyncpa [#allocation31 + $0x1], 1 }
 0x975   :  { %2401 = vsyncpa [#allocation5], 1 }
 0x976   :  { %2403 = vsyncpa [#allocation5 + $0x1], 1 }

</bundles_post_ra>
